<compile_context>
chip_gen: v7x
topology: tpu7x:2x2x1
jax: 0.10.0
libtpu: 0.0.40
codegen_flags: <defaults>
</compile_context>

<pallas_src>
import functools
import math

import jax
import jax.numpy as jnp
from jax.experimental import pallas as pl
from jax.experimental.pallas import tpu as pltpu

ALGEBRA_SUPPORT_RADIUS = math.pi * 1.6
_TWO_PI = 2.0 * math.pi
_EPS = 1e-6
_NEG_BIG = -1e30          # stand-in for -inf in the masked logsumexp
_LANE = 128
_SUB = 8
_BT = _SUB * _LANE        # 1024 batch elements per grid step = one (8,128) packing

_INV_R = 1.0 / ALGEBRA_SUPPORT_RADIUS
_LOG_R3 = 3.0 * math.log(ALGEBRA_SUPPORT_RADIUS)
_NEG_HALF_LOG_2PI3 = -1.5 * math.log(2.0 * math.pi)

# Host-side permutation of the row-major flattened rotation matrix (g[r,c] -> r*3+c)
# so that in-kernel: axis*2sin(theta) = rows 0:3 - rows 3:6 and trace = rows 6+7+8.
_G_PERM = (7, 2, 3, 5, 6, 1, 0, 4, 8)   # [g21,g02,g10, g12,g20,g01, g00,g11,g22]


def _atanh(t):
    # atanh via log1p (avoids relying on a dedicated atanh lowering)
    return 0.5 * (jnp.log1p(t) - jnp.log1p(-t))


def _neg_log_prob_kernel(x_ref, g_ref, w1t_ref, b1_ref, w2t_ref, b2_ref,
                         out_ref, p_sc, *, use_bf16_tanh):
    r = ALGEBRA_SUPPORT_RADIUS
    L = g_ref.shape[2]                     # 128 lanes per packed sublane row

    # ---- conditional flow parameters: MLP(x) -> (loc, log_scale), batch on GEMM lanes ----
    x = x_ref[...]                                                     # [DX, BT]
    h = jnp.dot(w1t_ref[...], x, preferred_element_type=jnp.float32) + b1_ref[...]   # [H, BT]
    if use_bf16_tanh:
        h = jnp.tanh(h.astype(jnp.bfloat16))      # native bf16 EUP on v6e/v7x (not v5e)
        w2 = w2t_ref[...].astype(jnp.bfloat16)
    else:
        h = jnp.tanh(h)
        w2 = w2t_ref[...]
    params = jnp.dot(w2, h, preferred_element_type=jnp.float32) + b2_ref[...]         # [6, BT]

    # ---- one-time relayout of the 6 param rows: lane b = s*L + l -> (sublane s, lane l) ----
    # Routed through a VMEM scratch with only static first-axis indexing so it lowers
    # unconditionally; after this every per-batch quantity is a full (8, L) vreg tile.
    for s in range(_SUB):
        ps = params[:, s * L:(s + 1) * L]          # [6, L] lane slice (128-aligned)
        for c in range(6):
            row = c * _SUB + s
            p_sc[row:row + 1, :] = ps[c:c + 1, :]
    loc0, loc1, loc2 = p_sc[0:8, :], p_sc[8:16, :], p_sc[16:24, :]      # [8, L] each
    ls0, ls1, ls2 = p_sc[24:32, :], p_sc[32:40, :], p_sc[40:48, :]
    sc0, sc1, sc2 = jnp.exp(ls0), jnp.exp(ls1), jnp.exp(ls2)
    sum_log_scale = ls0 + ls1 + ls2

    # ---- SO(3) log map, principal branch (g rows pre-permuted on host) ----
    # TODO(synk): theta ~= pi branch of so3_log (eigenvector fallback) not implemented.
    g = g_ref[...]                                 # [9, 8, L] packed
    a0 = g[0] - g[3]                               # g21 - g12   ([8, L])
    a1 = g[1] - g[4]                               # g02 - g20
    a2 = g[2] - g[5]                               # g10 - g01
    trace = g[6] + g[7] + g[8]
    cos_t = jnp.clip(0.5 * (trace - 1.0), -1.0 + 1e-7, 1.0 - 1e-7)
    sin_t = jnp.sqrt(jnp.maximum(1.0 - cos_t * cos_t, 1e-12))
    theta = jnp.arctan2(sin_t, cos_t)              # (0, pi); reuses sin_t (cheaper than arccos)
    theta_sq = theta * theta
    inv_theta = pl.reciprocal(jnp.maximum(theta, _EPS), approx=True)

    small = theta < 1e-3
    fac = jnp.where(
        small,
        0.5 + theta_sq * (1.0 / 12.0),
        theta * pl.reciprocal(jnp.maximum(2.0 * sin_t, _EPS), approx=True),
    )
    v0, v1, v2 = fac * a0, fac * a1, fac * a2      # principal log (|v| = theta)
    two_m_two_cos = jnp.maximum(2.0 - 2.0 * cos_t, 1e-12)

    # ---------------- preimage 0: principal branch, theta in (0, pi) ----------------
    ratio_exp0 = jnp.where(
        small, 1.0 - theta_sq * (1.0 / 12.0), two_m_two_cos * inv_theta * inv_theta
    )
    t0 = theta * _INV_R                            # = tanh(|u|), <= pi/r < 1
    u_norm0 = _atanh(t0)
    inv_s0 = u_norm0 * inv_theta                   # atanh(|v|/r)/|v|
    tan_ratio0 = t0 * pl.reciprocal(jnp.maximum(u_norm0, _EPS), approx=True)
    # folded log-dets: -(ldj_radialtanh + ldj_so3exp) with a single log per branch
    neg_ldj0 = -(jnp.log(ratio_exp0 * (1.0 - t0 * t0) * (tan_ratio0 * tan_ratio0)) + _LOG_R3)

    z00 = loc0 + sc0 * (v0 * inv_s0)
    z01 = loc1 + sc1 * (v1 * inv_s0)
    z02 = loc2 + sc2 * (v2 * inv_s0)
    lp0 = (-0.5 * (z00 * z00 + z01 * z01 + z02 * z02)
           + _NEG_HALF_LOG_2PI3 + sum_log_scale + neg_ldj0)

    # ---------------- preimage 1: |v1| = 2*pi - theta in (pi, 2*pi) ----------------
    theta1 = _TWO_PI - theta
    s1 = (theta - _TWO_PI) * inv_theta             # v1 = v * s1
    inv_theta1 = pl.reciprocal(theta1, approx=True)
    ratio_exp1 = two_m_two_cos * inv_theta1 * inv_theta1
    t1 = jnp.clip(theta1 * _INV_R, 0.0, 1.0 - 1e-6)
    u_norm1 = _atanh(t1)
    inv_s1 = u_norm1 * inv_theta1
    tan_ratio1 = t1 * pl.reciprocal(u_norm1, approx=True)   # u_norm1 >= atanh(pi/r) > 0.7
    neg_ldj1 = -(jnp.log(ratio_exp1 * (1.0 - t1 * t1) * (tan_ratio1 * tan_ratio1)) + _LOG_R3)

    f1 = s1 * inv_s1
    z10 = loc0 + sc0 * (v0 * f1)
    z11 = loc1 + sc1 * (v1 * f1)
    z12 = loc2 + sc2 * (v2 * f1)
    lp1_raw = (-0.5 * (z10 * z10 + z11 * z11 + z12 * z12)
               + _NEG_HALF_LOG_2PI3 + sum_log_scale + neg_ldj1)
    lp1 = jnp.where(theta1 < r, lp1_raw, _NEG_BIG)           # outside compact support

    # ---- logsumexp over the preimage set (one exp instead of two) ----
    m = jnp.maximum(lp0, lp1)
    d = jnp.abs(lp0 - lp1)
    out_ref[...] = -(m + jnp.log1p(jnp.exp(-d)))             # [8, L] unmasked full-vreg store
    # TODO(synk): ToTransform's float32->float64 cast has no TPU equivalent; kernel stays f32.


def flow_distr_neg_log_prob(x, g, w1, b1, w2, b2):
    """x: [B, DX] f32, g: [B, 3, 3] f32 rotation matrices -> [B] negative log prob."""
    B, DX = x.shape
    H = w1.shape[1]

    B_pad = ((B + _BT - 1) // _BT) * _BT
    n_sub = B_pad // _LANE                     # number of packed sublane rows
    pad = B_pad - B

    # Host-side packing: x stays [DX, B_pad] (GEMM lanes); g goes to [9, n_sub, 128]
    # with batch b = (tile*8 + s)*128 + l at (row, tile*8 + s, l).  Zero padding is
    # NaN-safe (padded lanes are discarded).
    x_t = x.astype(jnp.float32).T                                        # [DX, B]
    g9 = g.reshape(B, 9).astype(jnp.float32)[:, list(_G_PERM)]           # [B, 9] permuted
    if pad:
        x_t = jnp.pad(x_t, ((0, 0), (0, pad)))
        g9 = jnp.pad(g9, ((0, pad), (0, 0)))
    g_packed = g9.reshape(n_sub, _LANE, 9).transpose(2, 0, 1)            # [9, n_sub, 128]

    w1t = w1.astype(jnp.float32).T                                       # [H, DX]
    w2t = w2.astype(jnp.float32).T                                       # [6, H]
    b1t = b1.astype(jnp.float32).reshape(-1, 1)                          # [H, 1]
    b2t = b2.astype(jnp.float32).reshape(-1, 1)                          # [6, 1]

    # bf16 tanh only where the EUP/VPU have native bf16 (v6e / v7x and later).
    kind = jax.devices()[0].device_kind.lower()
    use_bf16_tanh = not any(v in kind for v in ("v2", "v3", "v4", "v5"))
    kernel = functools.partial(_neg_log_prob_kernel, use_bf16_tanh=use_bf16_tanh)

    out = pl.pallas_call(
        kernel,
        out_shape=jax.ShapeDtypeStruct((n_sub, _LANE), jnp.float32),
        grid_spec=pltpu.PrefetchScalarGridSpec(
            num_scalar_prefetch=0,
            grid=(B_pad // _BT,),
            in_specs=[
                pl.BlockSpec((DX, _BT), lambda i: (0, i)),
                pl.BlockSpec((9, _SUB, _LANE), lambda i: (0, i, 0)),
                pl.BlockSpec((H, DX), lambda i: (0, 0)),   # weights: constant block idx, no re-DMA
                pl.BlockSpec((H, 1), lambda i: (0, 0)),
                pl.BlockSpec((6, H), lambda i: (0, 0)),
                pl.BlockSpec((6, 1), lambda i: (0, 0)),
            ],
            out_specs=pl.BlockSpec((_SUB, _LANE), lambda i: (i, 0)),
            scratch_shapes=[pltpu.VMEM((6 * _SUB, _LANE), jnp.float32)],
        ),
        compiler_params=pltpu.CompilerParams(dimension_semantics=("parallel",)),
    )(x_t, g_packed, w1t, b1t, w2t, b2t)
    return out.reshape(-1)[:B]


def so3_exp(w):
    """Rodrigues formula (plain-JAX setup glue, not the kernel hot path). w: [B,3] -> [B,3,3]."""
    norm = jnp.linalg.norm(w, axis=-1, keepdims=True)
    theta = norm[..., None]                                              # [B,1,1]
    k = w / jnp.maximum(norm, 1e-9)
    kx, ky, kz = k[:, 0], k[:, 1], k[:, 2]
    zeros = jnp.zeros_like(kx)
    K = jnp.stack(
        [
            jnp.stack([zeros, -kz, ky], axis=-1),
            jnp.stack([kz, zeros, -kx], axis=-1),
            jnp.stack([-ky, kx, zeros], axis=-1),
        ],
        axis=-2,
    )                                                                    # [B,3,3]
    eye = jnp.eye(3, dtype=w.dtype)[None]
    return eye + jnp.sin(theta) * K + (1.0 - jnp.cos(theta)) * (K @ K)


if __name__ == "__main__":
    B, DX, H = 8, 16, 32
    key = jax.random.PRNGKey(0)
    k1, k2, k3, k4, k5 = jax.random.split(key, 5)

    # conditioning input
    x = jax.random.normal(k1, (B, DX), dtype=jnp.float32)

    # group elements g = exp(hat(w)) with rotation angles away from 0 and pi
    axis = jax.random.normal(k2, (B, 3), dtype=jnp.float32)
    axis = axis / jnp.linalg.norm(axis, axis=-1, keepdims=True)
    ang = jax.random.uniform(k3, (B, 1), dtype=jnp.float32, minval=0.2, maxval=2.8)
    g = so3_exp(axis * ang)                                              # [B, 3, 3]

    # deterministic flow-MLP parameters (synthetic; shapes implied by the conditional flow)
    w1 = 0.3 * jax.random.normal(k4, (DX, H), dtype=jnp.float32)
    b1 = jnp.zeros((1, H), dtype=jnp.float32)
    w2 = 0.3 * jax.random.normal(k5, (H, 6), dtype=jnp.float32)
    b2 = jnp.zeros((1, 6), dtype=jnp.float32)

    nll = flow_distr_neg_log_prob(x, g, w1, b1, w2, b2)
    nll = jax.block_until_ready(nll)

    # mirror the module's `assert torch.isnan(log_prob).sum() == 0`
    assert nll.shape == (B,)
    assert not bool(jnp.any(jnp.isnan(nll)))
    print("KERNEL_OK")
</pallas_src>

<mosaic_0001>
module attributes {stable_mosaic.version = 11 : i64} {
  func.func @_neg_log_prob_kernel(%arg0: i32, %arg1: memref<16x1024xf32, #tpu.memory_space<vmem>>, %arg2: memref<9x8x128xf32, #tpu.memory_space<vmem>>, %arg3: memref<32x16xf32, #tpu.memory_space<vmem>>, %arg4: memref<32x1xf32, #tpu.memory_space<vmem>>, %arg5: memref<6x32xf32, #tpu.memory_space<vmem>>, %arg6: memref<6x1xf32, #tpu.memory_space<vmem>>, %arg7: memref<8x128xf32, #tpu.memory_space<vmem>>, %arg8: memref<48x128xf32, #tpu.memory_space<vmem>>) attributes {dimension_semantics = [#tpu.dimension_semantics<parallel>], iteration_bounds = array<i64: 1>, scalar_prefetch = 0 : i64, scratch_operands = 1 : i64, tpu.core_type = #tpu.core_type<tc>, window_params = [{transform_indices = @transform_0, window_bounds = array<i64: 16, 1024>}, {transform_indices = @transform_1, window_bounds = array<i64: 9, 8, 128>}, {pipeline_mode = #tpu.pipeline_mode<synchronous>, transform_indices = @transform_2, window_bounds = array<i64: 32, 16>}, {pipeline_mode = #tpu.pipeline_mode<synchronous>, transform_indices = @transform_3, window_bounds = array<i64: 32, 1>}, {pipeline_mode = #tpu.pipeline_mode<synchronous>, transform_indices = @transform_4, window_bounds = array<i64: 6, 32>}, {pipeline_mode = #tpu.pipeline_mode<synchronous>, transform_indices = @transform_5, window_bounds = array<i64: 6, 1>}, {transform_indices = @transform_6, window_bounds = array<i64: 8, 128>}]} {
    %c0 = arith.constant 0 : index
    %c0_0 = arith.constant 0 : index
    %0 = vector.load %arg1[%c0, %c0_0] : memref<16x1024xf32, #tpu.memory_space<vmem>>, vector<16x1024xf32>
    %c0_1 = arith.constant 0 : index
    %c0_2 = arith.constant 0 : index
    %1 = vector.load %arg3[%c0_1, %c0_2] : memref<32x16xf32, #tpu.memory_space<vmem>>, vector<32x16xf32>
    %cst = arith.constant dense<0.000000e+00> : vector<32x1024xf32>
    %2 = tpu.matmul %1, %0, %cst {dimension_numbers = #tpu.dot_dimension_numbers<[1], [0], [0], [1], [0, 0, 1, 1], [], []>} : vector<32x16xf32>, vector<16x1024xf32>, vector<32x1024xf32> -> vector<32x1024xf32>
    %c0_3 = arith.constant 0 : index
    %c0_4 = arith.constant 0 : index
    %3 = vector.load %arg4[%c0_3, %c0_4] : memref<32x1xf32, #tpu.memory_space<vmem>>, vector<32x1xf32>
    %4 = vector.broadcast %3 : vector<32x1xf32> to vector<32x1024xf32>
    %5 = arith.addf %2, %4 : vector<32x1024xf32>
    %6 = arith.truncf %5 : vector<32x1024xf32> to vector<32x1024xbf16>
    %7 = math.tanh %6 : vector<32x1024xbf16>
    %c0_5 = arith.constant 0 : index
    %c0_6 = arith.constant 0 : index
    %8 = vector.load %arg5[%c0_5, %c0_6] : memref<6x32xf32, #tpu.memory_space<vmem>>, vector<6x32xf32>
    %9 = arith.truncf %8 : vector<6x32xf32> to vector<6x32xbf16>
    %cst_7 = arith.constant dense<0.000000e+00> : vector<6x1024xf32>
    %10 = tpu.matmul %9, %7, %cst_7 {dimension_numbers = #tpu.dot_dimension_numbers<[1], [0], [0], [1], [0, 0, 1, 1], [], []>} : vector<6x32xbf16>, vector<32x1024xbf16>, vector<6x1024xf32> -> vector<6x1024xf32>
    %c0_8 = arith.constant 0 : index
    %c0_9 = arith.constant 0 : index
    %11 = vector.load %arg6[%c0_8, %c0_9] : memref<6x1xf32, #tpu.memory_space<vmem>>, vector<6x1xf32>
    %12 = vector.broadcast %11 : vector<6x1xf32> to vector<6x1024xf32>
    %13 = arith.addf %10, %12 : vector<6x1024xf32>
    %14 = vector.extract_strided_slice %13 {offsets = [0, 0], sizes = [6, 128], strides = [1, 1]} : vector<6x1024xf32> to vector<6x128xf32>
    %15 = vector.extract_strided_slice %14 {offsets = [0, 0], sizes = [1, 128], strides = [1, 1]} : vector<6x128xf32> to vector<1x128xf32>
    %c0_10 = arith.constant 0 : index
    %c0_11 = arith.constant 0 : index
    %16 = vector.load %arg8[%c0_10, %c0_11] : memref<48x128xf32, #tpu.memory_space<vmem>>, vector<1x128xf32>
    tpu.vector_store %arg8[%c0_10, %c0_11], %15 {strides = array<i32>} : memref<48x128xf32, #tpu.memory_space<vmem>>, vector<1x128xf32>,
    %17 = vector.extract_strided_slice %14 {offsets = [1, 0], sizes = [1, 128], strides = [1, 1]} : vector<6x128xf32> to vector<1x128xf32>
    %c8 = arith.constant 8 : index
    %c0_12 = arith.constant 0 : index
    %18 = vector.load %arg8[%c8, %c0_12] : memref<48x128xf32, #tpu.memory_space<vmem>>, vector<1x128xf32>
    tpu.vector_store %arg8[%c8, %c0_12], %17 {strides = array<i32>} : memref<48x128xf32, #tpu.memory_space<vmem>>, vector<1x128xf32>,
    %19 = vector.extract_strided_slice %14 {offsets = [2, 0], sizes = [1, 128], strides = [1, 1]} : vector<6x128xf32> to vector<1x128xf32>
    %c16 = arith.constant 16 : index
    %c0_13 = arith.constant 0 : index
    %20 = vector.load %arg8[%c16, %c0_13] : memref<48x128xf32, #tpu.memory_space<vmem>>, vector<1x128xf32>
    tpu.vector_store %arg8[%c16, %c0_13], %19 {strides = array<i32>} : memref<48x128xf32, #tpu.memory_space<vmem>>, vector<1x128xf32>,
    %21 = vector.extract_strided_slice %14 {offsets = [3, 0], sizes = [1, 128], strides = [1, 1]} : vector<6x128xf32> to vector<1x128xf32>
    %c24 = arith.constant 24 : index
    %c0_14 = arith.constant 0 : index
    %22 = vector.load %arg8[%c24, %c0_14] : memref<48x128xf32, #tpu.memory_space<vmem>>, vector<1x128xf32>
    tpu.vector_store %arg8[%c24, %c0_14], %21 {strides = array<i32>} : memref<48x128xf32, #tpu.memory_space<vmem>>, vector<1x128xf32>,
    %23 = vector.extract_strided_slice %14 {offsets = [4, 0], sizes = [1, 128], strides = [1, 1]} : vector<6x128xf32> to vector<1x128xf32>
    %c32 = arith.constant 32 : index
    %c0_15 = arith.constant 0 : index
    %24 = vector.load %arg8[%c32, %c0_15] : memref<48x128xf32, #tpu.memory_space<vmem>>, vector<1x128xf32>
    tpu.vector_store %arg8[%c32, %c0_15], %23 {strides = array<i32>} : memref<48x128xf32, #tpu.memory_space<vmem>>, vector<1x128xf32>,
    %25 = vector.extract_strided_slice %14 {offsets = [5, 0], sizes = [1, 128], strides = [1, 1]} : vector<6x128xf32> to vector<1x128xf32>
    %c40 = arith.constant 40 : index
    %c0_16 = arith.constant 0 : index
    %26 = vector.load %arg8[%c40, %c0_16] : memref<48x128xf32, #tpu.memory_space<vmem>>, vector<1x128xf32>
    tpu.vector_store %arg8[%c40, %c0_16], %25 {strides = array<i32>} : memref<48x128xf32, #tpu.memory_space<vmem>>, vector<1x128xf32>,
    %27 = vector.extract_strided_slice %13 {offsets = [0, 128], sizes = [6, 128], strides = [1, 1]} : vector<6x1024xf32> to vector<6x128xf32>
    %28 = vector.extract_strided_slice %27 {offsets = [0, 0], sizes = [1, 128], strides = [1, 1]} : vector<6x128xf32> to vector<1x128xf32>
    %c1 = arith.constant 1 : index
    %c0_17 = arith.constant 0 : index
    %29 = vector.load %arg8[%c1, %c0_17] : memref<48x128xf32, #tpu.memory_space<vmem>>, vector<1x128xf32>
    tpu.vector_store %arg8[%c1, %c0_17], %28 {strides = array<i32>} : memref<48x128xf32, #tpu.memory_space<vmem>>, vector<1x128xf32>,
    %30 = vector.extract_strided_slice %27 {offsets = [1, 0], sizes = [1, 128], strides = [1, 1]} : vector<6x128xf32> to vector<1x128xf32>
    %c9 = arith.constant 9 : index
    %c0_18 = arith.constant 0 : index
    %31 = vector.load %arg8[%c9, %c0_18] : memref<48x128xf32, #tpu.memory_space<vmem>>, vector<1x128xf32>
    tpu.vector_store %arg8[%c9, %c0_18], %30 {strides = array<i32>} : memref<48x128xf32, #tpu.memory_space<vmem>>, vector<1x128xf32>,
    %32 = vector.extract_strided_slice %27 {offsets = [2, 0], sizes = [1, 128], strides = [1, 1]} : vector<6x128xf32> to vector<1x128xf32>
    %c17 = arith.constant 17 : index
    %c0_19 = arith.constant 0 : index
    %33 = vector.load %arg8[%c17, %c0_19] : memref<48x128xf32, #tpu.memory_space<vmem>>, vector<1x128xf32>
    tpu.vector_store %arg8[%c17, %c0_19], %32 {strides = array<i32>} : memref<48x128xf32, #tpu.memory_space<vmem>>, vector<1x128xf32>,
    %34 = vector.extract_strided_slice %27 {offsets = [3, 0], sizes = [1, 128], strides = [1, 1]} : vector<6x128xf32> to vector<1x128xf32>
    %c25 = arith.constant 25 : index
    %c0_20 = arith.constant 0 : index
    %35 = vector.load %arg8[%c25, %c0_20] : memref<48x128xf32, #tpu.memory_space<vmem>>, vector<1x128xf32>
    tpu.vector_store %arg8[%c25, %c0_20], %34 {strides = array<i32>} : memref<48x128xf32, #tpu.memory_space<vmem>>, vector<1x128xf32>,
    %36 = vector.extract_strided_slice %27 {offsets = [4, 0], sizes = [1, 128], strides = [1, 1]} : vector<6x128xf32> to vector<1x128xf32>
    %c33 = arith.constant 33 : index
    %c0_21 = arith.constant 0 : index
    %37 = vector.load %arg8[%c33, %c0_21] : memref<48x128xf32, #tpu.memory_space<vmem>>, vector<1x128xf32>
    tpu.vector_store %arg8[%c33, %c0_21], %36 {strides = array<i32>} : memref<48x128xf32, #tpu.memory_space<vmem>>, vector<1x128xf32>,
    %38 = vector.extract_strided_slice %27 {offsets = [5, 0], sizes = [1, 128], strides = [1, 1]} : vector<6x128xf32> to vector<1x128xf32>
    %c41 = arith.constant 41 : index
    %c0_22 = arith.constant 0 : index
    %39 = vector.load %arg8[%c41, %c0_22] : memref<48x128xf32, #tpu.memory_space<vmem>>, vector<1x128xf32>
    tpu.vector_store %arg8[%c41, %c0_22], %38 {strides = array<i32>} : memref<48x128xf32, #tpu.memory_space<vmem>>, vector<1x128xf32>,
    %40 = vector.extract_strided_slice %13 {offsets = [0, 256], sizes = [6, 128], strides = [1, 1]} : vector<6x1024xf32> to vector<6x128xf32>
    %41 = vector.extract_strided_slice %40 {offsets = [0, 0], sizes = [1, 128], strides = [1, 1]} : vector<6x128xf32> to vector<1x128xf32>
    %c2 = arith.constant 2 : index
    %c0_23 = arith.constant 0 : index
    %42 = vector.load %arg8[%c2, %c0_23] : memref<48x128xf32, #tpu.memory_space<vmem>>, vector<1x128xf32>
    tpu.vector_store %arg8[%c2, %c0_23], %41 {strides = array<i32>} : memref<48x128xf32, #tpu.memory_space<vmem>>, vector<1x128xf32>,
    %43 = vector.extract_strided_slice %40 {offsets = [1, 0], sizes = [1, 128], strides = [1, 1]} : vector<6x128xf32> to vector<1x128xf32>
    %c10 = arith.constant 10 : index
    %c0_24 = arith.constant 0 : index
    %44 = vector.load %arg8[%c10, %c0_24] : memref<48x128xf32, #tpu.memory_space<vmem>>, vector<1x128xf32>
    tpu.vector_store %arg8[%c10, %c0_24], %43 {strides = array<i32>} : memref<48x128xf32, #tpu.memory_space<vmem>>, vector<1x128xf32>,
    %45 = vector.extract_strided_slice %40 {offsets = [2, 0], sizes = [1, 128], strides = [1, 1]} : vector<6x128xf32> to vector<1x128xf32>
    %c18 = arith.constant 18 : index
    %c0_25 = arith.constant 0 : index
    %46 = vector.load %arg8[%c18, %c0_25] : memref<48x128xf32, #tpu.memory_space<vmem>>, vector<1x128xf32>
    tpu.vector_store %arg8[%c18, %c0_25], %45 {strides = array<i32>} : memref<48x128xf32, #tpu.memory_space<vmem>>, vector<1x128xf32>,
    %47 = vector.extract_strided_slice %40 {offsets = [3, 0], sizes = [1, 128], strides = [1, 1]} : vector<6x128xf32> to vector<1x128xf32>
    %c26 = arith.constant 26 : index
    %c0_26 = arith.constant 0 : index
    %48 = vector.load %arg8[%c26, %c0_26] : memref<48x128xf32, #tpu.memory_space<vmem>>, vector<1x128xf32>
    tpu.vector_store %arg8[%c26, %c0_26], %47 {strides = array<i32>} : memref<48x128xf32, #tpu.memory_space<vmem>>, vector<1x128xf32>,
    %49 = vector.extract_strided_slice %40 {offsets = [4, 0], sizes = [1, 128], strides = [1, 1]} : vector<6x128xf32> to vector<1x128xf32>
    %c34 = arith.constant 34 : index
    %c0_27 = arith.constant 0 : index
    %50 = vector.load %arg8[%c34, %c0_27] : memref<48x128xf32, #tpu.memory_space<vmem>>, vector<1x128xf32>
    tpu.vector_store %arg8[%c34, %c0_27], %49 {strides = array<i32>} : memref<48x128xf32, #tpu.memory_space<vmem>>, vector<1x128xf32>,
    %51 = vector.extract_strided_slice %40 {offsets = [5, 0], sizes = [1, 128], strides = [1, 1]} : vector<6x128xf32> to vector<1x128xf32>
    %c42 = arith.constant 42 : index
    %c0_28 = arith.constant 0 : index
    %52 = vector.load %arg8[%c42, %c0_28] : memref<48x128xf32, #tpu.memory_space<vmem>>, vector<1x128xf32>
    tpu.vector_store %arg8[%c42, %c0_28], %51 {strides = array<i32>} : memref<48x128xf32, #tpu.memory_space<vmem>>, vector<1x128xf32>,
    %53 = vector.extract_strided_slice %13 {offsets = [0, 384], sizes = [6, 128], strides = [1, 1]} : vector<6x1024xf32> to vector<6x128xf32>
    %54 = vector.extract_strided_slice %53 {offsets = [0, 0], sizes = [1, 128], strides = [1, 1]} : vector<6x128xf32> to vector<1x128xf32>
    %c3 = arith.constant 3 : index
    %c0_29 = arith.constant 0 : index
    %55 = vector.load %arg8[%c3, %c0_29] : memref<48x128xf32, #tpu.memory_space<vmem>>, vector<1x128xf32>
    tpu.vector_store %arg8[%c3, %c0_29], %54 {strides = array<i32>} : memref<48x128xf32, #tpu.memory_space<vmem>>, vector<1x128xf32>,
    %56 = vector.extract_strided_slice %53 {offsets = [1, 0], sizes = [1, 128], strides = [1, 1]} : vector<6x128xf32> to vector<1x128xf32>
    %c11 = arith.constant 11 : index
    %c0_30 = arith.constant 0 : index
    %57 = vector.load %arg8[%c11, %c0_30] : memref<48x128xf32, #tpu.memory_space<vmem>>, vector<1x128xf32>
    tpu.vector_store %arg8[%c11, %c0_30], %56 {strides = array<i32>} : memref<48x128xf32, #tpu.memory_space<vmem>>, vector<1x128xf32>,
    %58 = vector.extract_strided_slice %53 {offsets = [2, 0], sizes = [1, 128], strides = [1, 1]} : vector<6x128xf32> to vector<1x128xf32>
    %c19 = arith.constant 19 : index
    %c0_31 = arith.constant 0 : index
    %59 = vector.load %arg8[%c19, %c0_31] : memref<48x128xf32, #tpu.memory_space<vmem>>, vector<1x128xf32>
    tpu.vector_store %arg8[%c19, %c0_31], %58 {strides = array<i32>} : memref<48x128xf32, #tpu.memory_space<vmem>>, vector<1x128xf32>,
    %60 = vector.extract_strided_slice %53 {offsets = [3, 0], sizes = [1, 128], strides = [1, 1]} : vector<6x128xf32> to vector<1x128xf32>
    %c27 = arith.constant 27 : index
    %c0_32 = arith.constant 0 : index
    %61 = vector.load %arg8[%c27, %c0_32] : memref<48x128xf32, #tpu.memory_space<vmem>>, vector<1x128xf32>
    tpu.vector_store %arg8[%c27, %c0_32], %60 {strides = array<i32>} : memref<48x128xf32, #tpu.memory_space<vmem>>, vector<1x128xf32>,
    %62 = vector.extract_strided_slice %53 {offsets = [4, 0], sizes = [1, 128], strides = [1, 1]} : vector<6x128xf32> to vector<1x128xf32>
    %c35 = arith.constant 35 : index
    %c0_33 = arith.constant 0 : index
    %63 = vector.load %arg8[%c35, %c0_33] : memref<48x128xf32, #tpu.memory_space<vmem>>, vector<1x128xf32>
    tpu.vector_store %arg8[%c35, %c0_33], %62 {strides = array<i32>} : memref<48x128xf32, #tpu.memory_space<vmem>>, vector<1x128xf32>,
    %64 = vector.extract_strided_slice %53 {offsets = [5, 0], sizes = [1, 128], strides = [1, 1]} : vector<6x128xf32> to vector<1x128xf32>
    %c43 = arith.constant 43 : index
    %c0_34 = arith.constant 0 : index
    %65 = vector.load %arg8[%c43, %c0_34] : memref<48x128xf32, #tpu.memory_space<vmem>>, vector<1x128xf32>
    tpu.vector_store %arg8[%c43, %c0_34], %64 {strides = array<i32>} : memref<48x128xf32, #tpu.memory_space<vmem>>, vector<1x128xf32>,
    %66 = vector.extract_strided_slice %13 {offsets = [0, 512], sizes = [6, 128], strides = [1, 1]} : vector<6x1024xf32> to vector<6x128xf32>
    %67 = vector.extract_strided_slice %66 {offsets = [0, 0], sizes = [1, 128], strides = [1, 1]} : vector<6x128xf32> to vector<1x128xf32>
    %c4 = arith.constant 4 : index
    %c0_35 = arith.constant 0 : index
    %68 = vector.load %arg8[%c4, %c0_35] : memref<48x128xf32, #tpu.memory_space<vmem>>, vector<1x128xf32>
    tpu.vector_store %arg8[%c4, %c0_35], %67 {strides = array<i32>} : memref<48x128xf32, #tpu.memory_space<vmem>>, vector<1x128xf32>,
    %69 = vector.extract_strided_slice %66 {offsets = [1, 0], sizes = [1, 128], strides = [1, 1]} : vector<6x128xf32> to vector<1x128xf32>
    %c12 = arith.constant 12 : index
    %c0_36 = arith.constant 0 : index
    %70 = vector.load %arg8[%c12, %c0_36] : memref<48x128xf32, #tpu.memory_space<vmem>>, vector<1x128xf32>
    tpu.vector_store %arg8[%c12, %c0_36], %69 {strides = array<i32>} : memref<48x128xf32, #tpu.memory_space<vmem>>, vector<1x128xf32>,
    %71 = vector.extract_strided_slice %66 {offsets = [2, 0], sizes = [1, 128], strides = [1, 1]} : vector<6x128xf32> to vector<1x128xf32>
    %c20 = arith.constant 20 : index
    %c0_37 = arith.constant 0 : index
    %72 = vector.load %arg8[%c20, %c0_37] : memref<48x128xf32, #tpu.memory_space<vmem>>, vector<1x128xf32>
    tpu.vector_store %arg8[%c20, %c0_37], %71 {strides = array<i32>} : memref<48x128xf32, #tpu.memory_space<vmem>>, vector<1x128xf32>,
    %73 = vector.extract_strided_slice %66 {offsets = [3, 0], sizes = [1, 128], strides = [1, 1]} : vector<6x128xf32> to vector<1x128xf32>
    %c28 = arith.constant 28 : index
    %c0_38 = arith.constant 0 : index
    %74 = vector.load %arg8[%c28, %c0_38] : memref<48x128xf32, #tpu.memory_space<vmem>>, vector<1x128xf32>
    tpu.vector_store %arg8[%c28, %c0_38], %73 {strides = array<i32>} : memref<48x128xf32, #tpu.memory_space<vmem>>, vector<1x128xf32>,
    %75 = vector.extract_strided_slice %66 {offsets = [4, 0], sizes = [1, 128], strides = [1, 1]} : vector<6x128xf32> to vector<1x128xf32>
    %c36 = arith.constant 36 : index
    %c0_39 = arith.constant 0 : index
    %76 = vector.load %arg8[%c36, %c0_39] : memref<48x128xf32, #tpu.memory_space<vmem>>, vector<1x128xf32>
    tpu.vector_store %arg8[%c36, %c0_39], %75 {strides = array<i32>} : memref<48x128xf32, #tpu.memory_space<vmem>>, vector<1x128xf32>,
    %77 = vector.extract_strided_slice %66 {offsets = [5, 0], sizes = [1, 128], strides = [1, 1]} : vector<6x128xf32> to vector<1x128xf32>
    %c44 = arith.constant 44 : index
    %c0_40 = arith.constant 0 : index
    %78 = vector.load %arg8[%c44, %c0_40] : memref<48x128xf32, #tpu.memory_space<vmem>>, vector<1x128xf32>
    tpu.vector_store %arg8[%c44, %c0_40], %77 {strides = array<i32>} : memref<48x128xf32, #tpu.memory_space<vmem>>, vector<1x128xf32>,
    %79 = vector.extract_strided_slice %13 {offsets = [0, 640], sizes = [6, 128], strides = [1, 1]} : vector<6x1024xf32> to vector<6x128xf32>
    %80 = vector.extract_strided_slice %79 {offsets = [0, 0], sizes = [1, 128], strides = [1, 1]} : vector<6x128xf32> to vector<1x128xf32>
    %c5 = arith.constant 5 : index
    %c0_41 = arith.constant 0 : index
    %81 = vector.load %arg8[%c5, %c0_41] : memref<48x128xf32, #tpu.memory_space<vmem>>, vector<1x128xf32>
    tpu.vector_store %arg8[%c5, %c0_41], %80 {strides = array<i32>} : memref<48x128xf32, #tpu.memory_space<vmem>>, vector<1x128xf32>,
    %82 = vector.extract_strided_slice %79 {offsets = [1, 0], sizes = [1, 128], strides = [1, 1]} : vector<6x128xf32> to vector<1x128xf32>
    %c13 = arith.constant 13 : index
    %c0_42 = arith.constant 0 : index
    %83 = vector.load %arg8[%c13, %c0_42] : memref<48x128xf32, #tpu.memory_space<vmem>>, vector<1x128xf32>
    tpu.vector_store %arg8[%c13, %c0_42], %82 {strides = array<i32>} : memref<48x128xf32, #tpu.memory_space<vmem>>, vector<1x128xf32>,
    %84 = vector.extract_strided_slice %79 {offsets = [2, 0], sizes = [1, 128], strides = [1, 1]} : vector<6x128xf32> to vector<1x128xf32>
    %c21 = arith.constant 21 : index
    %c0_43 = arith.constant 0 : index
    %85 = vector.load %arg8[%c21, %c0_43] : memref<48x128xf32, #tpu.memory_space<vmem>>, vector<1x128xf32>
    tpu.vector_store %arg8[%c21, %c0_43], %84 {strides = array<i32>} : memref<48x128xf32, #tpu.memory_space<vmem>>, vector<1x128xf32>,
    %86 = vector.extract_strided_slice %79 {offsets = [3, 0], sizes = [1, 128], strides = [1, 1]} : vector<6x128xf32> to vector<1x128xf32>
    %c29 = arith.constant 29 : index
    %c0_44 = arith.constant 0 : index
    %87 = vector.load %arg8[%c29, %c0_44] : memref<48x128xf32, #tpu.memory_space<vmem>>, vector<1x128xf32>
    tpu.vector_store %arg8[%c29, %c0_44], %86 {strides = array<i32>} : memref<48x128xf32, #tpu.memory_space<vmem>>, vector<1x128xf32>,
    %88 = vector.extract_strided_slice %79 {offsets = [4, 0], sizes = [1, 128], strides = [1, 1]} : vector<6x128xf32> to vector<1x128xf32>
    %c37 = arith.constant 37 : index
    %c0_45 = arith.constant 0 : index
    %89 = vector.load %arg8[%c37, %c0_45] : memref<48x128xf32, #tpu.memory_space<vmem>>, vector<1x128xf32>
    tpu.vector_store %arg8[%c37, %c0_45], %88 {strides = array<i32>} : memref<48x128xf32, #tpu.memory_space<vmem>>, vector<1x128xf32>,
    %90 = vector.extract_strided_slice %79 {offsets = [5, 0], sizes = [1, 128], strides = [1, 1]} : vector<6x128xf32> to vector<1x128xf32>
    %c45 = arith.constant 45 : index
    %c0_46 = arith.constant 0 : index
    %91 = vector.load %arg8[%c45, %c0_46] : memref<48x128xf32, #tpu.memory_space<vmem>>, vector<1x128xf32>
    tpu.vector_store %arg8[%c45, %c0_46], %90 {strides = array<i32>} : memref<48x128xf32, #tpu.memory_space<vmem>>, vector<1x128xf32>,
    %92 = vector.extract_strided_slice %13 {offsets = [0, 768], sizes = [6, 128], strides = [1, 1]} : vector<6x1024xf32> to vector<6x128xf32>
    %93 = vector.extract_strided_slice %92 {offsets = [0, 0], sizes = [1, 128], strides = [1, 1]} : vector<6x128xf32> to vector<1x128xf32>
    %c6 = arith.constant 6 : index
    %c0_47 = arith.constant 0 : index
    %94 = vector.load %arg8[%c6, %c0_47] : memref<48x128xf32, #tpu.memory_space<vmem>>, vector<1x128xf32>
    tpu.vector_store %arg8[%c6, %c0_47], %93 {strides = array<i32>} : memref<48x128xf32, #tpu.memory_space<vmem>>, vector<1x128xf32>,
    %95 = vector.extract_strided_slice %92 {offsets = [1, 0], sizes = [1, 128], strides = [1, 1]} : vector<6x128xf32> to vector<1x128xf32>
    %c14 = arith.constant 14 : index
    %c0_48 = arith.constant 0 : index
    %96 = vector.load %arg8[%c14, %c0_48] : memref<48x128xf32, #tpu.memory_space<vmem>>, vector<1x128xf32>
    tpu.vector_store %arg8[%c14, %c0_48], %95 {strides = array<i32>} : memref<48x128xf32, #tpu.memory_space<vmem>>, vector<1x128xf32>,
    %97 = vector.extract_strided_slice %92 {offsets = [2, 0], sizes = [1, 128], strides = [1, 1]} : vector<6x128xf32> to vector<1x128xf32>
    %c22 = arith.constant 22 : index
    %c0_49 = arith.constant 0 : index
    %98 = vector.load %arg8[%c22, %c0_49] : memref<48x128xf32, #tpu.memory_space<vmem>>, vector<1x128xf32>
    tpu.vector_store %arg8[%c22, %c0_49], %97 {strides = array<i32>} : memref<48x128xf32, #tpu.memory_space<vmem>>, vector<1x128xf32>,
    %99 = vector.extract_strided_slice %92 {offsets = [3, 0], sizes = [1, 128], strides = [1, 1]} : vector<6x128xf32> to vector<1x128xf32>
    %c30 = arith.constant 30 : index
    %c0_50 = arith.constant 0 : index
    %100 = vector.load %arg8[%c30, %c0_50] : memref<48x128xf32, #tpu.memory_space<vmem>>, vector<1x128xf32>
    tpu.vector_store %arg8[%c30, %c0_50], %99 {strides = array<i32>} : memref<48x128xf32, #tpu.memory_space<vmem>>, vector<1x128xf32>,
    %101 = vector.extract_strided_slice %92 {offsets = [4, 0], sizes = [1, 128], strides = [1, 1]} : vector<6x128xf32> to vector<1x128xf32>
    %c38 = arith.constant 38 : index
    %c0_51 = arith.constant 0 : index
    %102 = vector.load %arg8[%c38, %c0_51] : memref<48x128xf32, #tpu.memory_space<vmem>>, vector<1x128xf32>
    tpu.vector_store %arg8[%c38, %c0_51], %101 {strides = array<i32>} : memref<48x128xf32, #tpu.memory_space<vmem>>, vector<1x128xf32>,
    %103 = vector.extract_strided_slice %92 {offsets = [5, 0], sizes = [1, 128], strides = [1, 1]} : vector<6x128xf32> to vector<1x128xf32>
    %c46 = arith.constant 46 : index
    %c0_52 = arith.constant 0 : index
    %104 = vector.load %arg8[%c46, %c0_52] : memref<48x128xf32, #tpu.memory_space<vmem>>, vector<1x128xf32>
    tpu.vector_store %arg8[%c46, %c0_52], %103 {strides = array<i32>} : memref<48x128xf32, #tpu.memory_space<vmem>>, vector<1x128xf32>,
    %105 = vector.extract_strided_slice %13 {offsets = [0, 896], sizes = [6, 128], strides = [1, 1]} : vector<6x1024xf32> to vector<6x128xf32>
    %106 = vector.extract_strided_slice %105 {offsets = [0, 0], sizes = [1, 128], strides = [1, 1]} : vector<6x128xf32> to vector<1x128xf32>
    %c7 = arith.constant 7 : index
    %c0_53 = arith.constant 0 : index
    %107 = vector.load %arg8[%c7, %c0_53] : memref<48x128xf32, #tpu.memory_space<vmem>>, vector<1x128xf32>
    tpu.vector_store %arg8[%c7, %c0_53], %106 {strides = array<i32>} : memref<48x128xf32, #tpu.memory_space<vmem>>, vector<1x128xf32>,
    %108 = vector.extract_strided_slice %105 {offsets = [1, 0], sizes = [1, 128], strides = [1, 1]} : vector<6x128xf32> to vector<1x128xf32>
    %c15 = arith.constant 15 : index
    %c0_54 = arith.constant 0 : index
    %109 = vector.load %arg8[%c15, %c0_54] : memref<48x128xf32, #tpu.memory_space<vmem>>, vector<1x128xf32>
    tpu.vector_store %arg8[%c15, %c0_54], %108 {strides = array<i32>} : memref<48x128xf32, #tpu.memory_space<vmem>>, vector<1x128xf32>,
    %110 = vector.extract_strided_slice %105 {offsets = [2, 0], sizes = [1, 128], strides = [1, 1]} : vector<6x128xf32> to vector<1x128xf32>
    %c23 = arith.constant 23 : index
    %c0_55 = arith.constant 0 : index
    %111 = vector.load %arg8[%c23, %c0_55] : memref<48x128xf32, #tpu.memory_space<vmem>>, vector<1x128xf32>
    tpu.vector_store %arg8[%c23, %c0_55], %110 {strides = array<i32>} : memref<48x128xf32, #tpu.memory_space<vmem>>, vector<1x128xf32>,
    %112 = vector.extract_strided_slice %105 {offsets = [3, 0], sizes = [1, 128], strides = [1, 1]} : vector<6x128xf32> to vector<1x128xf32>
    %c31 = arith.constant 31 : index
    %c0_56 = arith.constant 0 : index
    %113 = vector.load %arg8[%c31, %c0_56] : memref<48x128xf32, #tpu.memory_space<vmem>>, vector<1x128xf32>
    tpu.vector_store %arg8[%c31, %c0_56], %112 {strides = array<i32>} : memref<48x128xf32, #tpu.memory_space<vmem>>, vector<1x128xf32>,
    %114 = vector.extract_strided_slice %105 {offsets = [4, 0], sizes = [1, 128], strides = [1, 1]} : vector<6x128xf32> to vector<1x128xf32>
    %c39 = arith.constant 39 : index
    %c0_57 = arith.constant 0 : index
    %115 = vector.load %arg8[%c39, %c0_57] : memref<48x128xf32, #tpu.memory_space<vmem>>, vector<1x128xf32>
    tpu.vector_store %arg8[%c39, %c0_57], %114 {strides = array<i32>} : memref<48x128xf32, #tpu.memory_space<vmem>>, vector<1x128xf32>,
    %116 = vector.extract_strided_slice %105 {offsets = [5, 0], sizes = [1, 128], strides = [1, 1]} : vector<6x128xf32> to vector<1x128xf32>
    %c47 = arith.constant 47 : index
    %c0_58 = arith.constant 0 : index
    %117 = vector.load %arg8[%c47, %c0_58] : memref<48x128xf32, #tpu.memory_space<vmem>>, vector<1x128xf32>
    tpu.vector_store %arg8[%c47, %c0_58], %116 {strides = array<i32>} : memref<48x128xf32, #tpu.memory_space<vmem>>, vector<1x128xf32>,
    %c0_59 = arith.constant 0 : index
    %c0_60 = arith.constant 0 : index
    %118 = vector.load %arg8[%c0_59, %c0_60] : memref<48x128xf32, #tpu.memory_space<vmem>>, vector<8x128xf32>
    %c8_61 = arith.constant 8 : index
    %c0_62 = arith.constant 0 : index
    %119 = vector.load %arg8[%c8_61, %c0_62] : memref<48x128xf32, #tpu.memory_space<vmem>>, vector<8x128xf32>
    %c16_63 = arith.constant 16 : index
    %c0_64 = arith.constant 0 : index
    %120 = vector.load %arg8[%c16_63, %c0_64] : memref<48x128xf32, #tpu.memory_space<vmem>>, vector<8x128xf32>
    %c24_65 = arith.constant 24 : index
    %c0_66 = arith.constant 0 : index
    %121 = vector.load %arg8[%c24_65, %c0_66] : memref<48x128xf32, #tpu.memory_space<vmem>>, vector<8x128xf32>
    %c32_67 = arith.constant 32 : index
    %c0_68 = arith.constant 0 : index
    %122 = vector.load %arg8[%c32_67, %c0_68] : memref<48x128xf32, #tpu.memory_space<vmem>>, vector<8x128xf32>
    %c40_69 = arith.constant 40 : index
    %c0_70 = arith.constant 0 : index
    %123 = vector.load %arg8[%c40_69, %c0_70] : memref<48x128xf32, #tpu.memory_space<vmem>>, vector<8x128xf32>
    %124 = math.exp %121 : vector<8x128xf32>
    %125 = math.exp %122 : vector<8x128xf32>
    %126 = math.exp %123 : vector<8x128xf32>
    %127 = arith.addf %121, %122 : vector<8x128xf32>
    %128 = arith.addf %127, %123 : vector<8x128xf32>
    %c0_71 = arith.constant 0 : index
    %c0_72 = arith.constant 0 : index
    %c0_73 = arith.constant 0 : index
    %129 = vector.load %arg2[%c0_71, %c0_72, %c0_73] : memref<9x8x128xf32, #tpu.memory_space<vmem>>, vector<9x8x128xf32>
    %130 = vector.extract_strided_slice %129 {offsets = [0, 0, 0], sizes = [1, 8, 128], strides = [1, 1, 1]} : vector<9x8x128xf32> to vector<1x8x128xf32>
    %131 = vector.shape_cast %130 : vector<1x8x128xf32> to vector<8x128xf32>
    %132 = vector.extract_strided_slice %129 {offsets = [3, 0, 0], sizes = [1, 8, 128], strides = [1, 1, 1]} : vector<9x8x128xf32> to vector<1x8x128xf32>
    %133 = vector.shape_cast %132 : vector<1x8x128xf32> to vector<8x128xf32>
    %134 = arith.subf %131, %133 : vector<8x128xf32>
    %135 = vector.extract_strided_slice %129 {offsets = [1, 0, 0], sizes = [1, 8, 128], strides = [1, 1, 1]} : vector<9x8x128xf32> to vector<1x8x128xf32>
    %136 = vector.shape_cast %135 : vector<1x8x128xf32> to vector<8x128xf32>
    %137 = vector.extract_strided_slice %129 {offsets = [4, 0, 0], sizes = [1, 8, 128], strides = [1, 1, 1]} : vector<9x8x128xf32> to vector<1x8x128xf32>
    %138 = vector.shape_cast %137 : vector<1x8x128xf32> to vector<8x128xf32>
    %139 = arith.subf %136, %138 : vector<8x128xf32>
    %140 = vector.extract_strided_slice %129 {offsets = [2, 0, 0], sizes = [1, 8, 128], strides = [1, 1, 1]} : vector<9x8x128xf32> to vector<1x8x128xf32>
    %141 = vector.shape_cast %140 : vector<1x8x128xf32> to vector<8x128xf32>
    %142 = vector.extract_strided_slice %129 {offsets = [5, 0, 0], sizes = [1, 8, 128], strides = [1, 1, 1]} : vector<9x8x128xf32> to vector<1x8x128xf32>
    %143 = vector.shape_cast %142 : vector<1x8x128xf32> to vector<8x128xf32>
    %144 = arith.subf %141, %143 : vector<8x128xf32>
    %145 = vector.extract_strided_slice %129 {offsets = [6, 0, 0], sizes = [1, 8, 128], strides = [1, 1, 1]} : vector<9x8x128xf32> to vector<1x8x128xf32>
    %146 = vector.shape_cast %145 : vector<1x8x128xf32> to vector<8x128xf32>
    %147 = vector.extract_strided_slice %129 {offsets = [7, 0, 0], sizes = [1, 8, 128], strides = [1, 1, 1]} : vector<9x8x128xf32> to vector<1x8x128xf32>
    %148 = vector.shape_cast %147 : vector<1x8x128xf32> to vector<8x128xf32>
    %149 = arith.addf %146, %148 : vector<8x128xf32>
    %150 = vector.extract_strided_slice %129 {offsets = [8, 0, 0], sizes = [1, 8, 128], strides = [1, 1, 1]} : vector<9x8x128xf32> to vector<1x8x128xf32>
    %151 = vector.shape_cast %150 : vector<1x8x128xf32> to vector<8x128xf32>
    %152 = arith.addf %149, %151 : vector<8x128xf32>
    %cst_74 = arith.constant 1.000000e+00 : f32
    %153 = vector.broadcast %cst_74 : f32 to vector<8x128xf32>
    %154 = arith.subf %152, %153 : vector<8x128xf32>
    %cst_75 = arith.constant 5.000000e-01 : f32
    %155 = vector.broadcast %cst_75 : f32 to vector<8x128xf32>
    %156 = arith.mulf %155, %154 : vector<8x128xf32>
    %cst_76 = arith.constant -0.99999988 : f32
    %cst_77 = arith.constant 0.99999988 : f32
    %157 = vector.broadcast %cst_76 : f32 to vector<8x128xf32>
    %158 = arith.maximumf %157, %156 : vector<8x128xf32>
    %159 = vector.broadcast %cst_77 : f32 to vector<8x128xf32>
    %160 = arith.minimumf %159, %158 : vector<8x128xf32>
    %161 = arith.mulf %160, %160 : vector<8x128xf32>
    %cst_78 = arith.constant 1.000000e+00 : f32
    %162 = vector.broadcast %cst_78 : f32 to vector<8x128xf32>
    %163 = arith.subf %162, %161 : vector<8x128xf32>
    %cst_79 = arith.constant 9.99999996E-13 : f32
    %164 = vector.broadcast %cst_79 : f32 to vector<8x128xf32>
    %165 = arith.maximumf %163, %164 : vector<8x128xf32>
    %166 = math.sqrt %165 : vector<8x128xf32>
    %167 = math.atan2 %166, %160 : vector<8x128xf32>
    %168 = arith.mulf %167, %167 : vector<8x128xf32>
    %cst_80 = arith.constant 9.99999997E-7 : f32
    %169 = vector.broadcast %cst_80 : f32 to vector<8x128xf32>
    %170 = arith.maximumf %167, %169 : vector<8x128xf32>
    %171 = tpu.reciprocal %170 {approx = true} : vector<8x128xf32> -> vector<8x128xf32>
    %cst_81 = arith.constant 1.000000e-03 : f32
    %172 = vector.broadcast %cst_81 : f32 to vector<8x128xf32>
    %173 = arith.cmpf olt, %167, %172 : vector<8x128xf32>
    %cst_82 = arith.constant 0.0833333358 : f32
    %174 = vector.broadcast %cst_82 : f32 to vector<8x128xf32>
    %175 = arith.mulf %168, %174 : vector<8x128xf32>
    %cst_83 = arith.constant 5.000000e-01 : f32
    %176 = vector.broadcast %cst_83 : f32 to vector<8x128xf32>
    %177 = arith.addf %176, %175 : vector<8x128xf32>
    %cst_84 = arith.constant 2.000000e+00 : f32
    %178 = vector.broadcast %cst_84 : f32 to vector<8x128xf32>
    %179 = arith.mulf %178, %166 : vector<8x128xf32>
    %cst_85 = arith.constant 9.99999997E-7 : f32
    %180 = vector.broadcast %cst_85 : f32 to vector<8x128xf32>
    %181 = arith.maximumf %179, %180 : vector<8x128xf32>
    %182 = tpu.reciprocal %181 {approx = true} : vector<8x128xf32> -> vector<8x128xf32>
    %183 = arith.mulf %167, %182 : vector<8x128xf32>
    %184 = arith.select %173, %177, %183 : vector<8x128xi1>, vector<8x128xf32>
    %185 = arith.mulf %184, %134 : vector<8x128xf32>
    %186 = arith.mulf %184, %139 : vector<8x128xf32>
    %187 = arith.mulf %184, %144 : vector<8x128xf32>
    %cst_86 = arith.constant 2.000000e+00 : f32
    %188 = vector.broadcast %cst_86 : f32 to vector<8x128xf32>
    %189 = arith.mulf %188, %160 : vector<8x128xf32>
    %cst_87 = arith.constant 2.000000e+00 : f32
    %190 = vector.broadcast %cst_87 : f32 to vector<8x128xf32>
    %191 = arith.subf %190, %189 : vector<8x128xf32>
    %cst_88 = arith.constant 9.99999996E-13 : f32
    %192 = vector.broadcast %cst_88 : f32 to vector<8x128xf32>
    %193 = arith.maximumf %191, %192 : vector<8x128xf32>
    %cst_89 = arith.constant 0.0833333358 : f32
    %194 = vector.broadcast %cst_89 : f32 to vector<8x128xf32>
    %195 = arith.mulf %168, %194 : vector<8x128xf32>
    %cst_90 = arith.constant 1.000000e+00 : f32
    %196 = vector.broadcast %cst_90 : f32 to vector<8x128xf32>
    %197 = arith.subf %196, %195 : vector<8x128xf32>
    %198 = arith.mulf %193, %171 : vector<8x128xf32>
    %199 = arith.mulf %198, %171 : vector<8x128xf32>
    %200 = arith.select %173, %197, %199 : vector<8x128xi1>, vector<8x128xf32>
    %cst_91 = arith.constant 0.198943675 : f32
    %201 = vector.broadcast %cst_91 : f32 to vector<8x128xf32>
    %202 = arith.mulf %167, %201 : vector<8x128xf32>
    %203 = math.log1p %202 : vector<8x128xf32>
    %cst_92 = arith.constant 0.000000e+00 : f32
    %204 = vector.broadcast %cst_92 : f32 to vector<8x128xf32>
    %205 = arith.subf %204, %202 : vector<8x128xf32>
    %206 = math.log1p %205 : vector<8x128xf32>
    %207 = arith.subf %203, %206 : vector<8x128xf32>
    %cst_93 = arith.constant 5.000000e-01 : f32
    %208 = vector.broadcast %cst_93 : f32 to vector<8x128xf32>
    %209 = arith.mulf %208, %207 : vector<8x128xf32>
    %210 = arith.mulf %209, %171 : vector<8x128xf32>
    %cst_94 = arith.constant 9.99999997E-7 : f32
    %211 = vector.broadcast %cst_94 : f32 to vector<8x128xf32>
    %212 = arith.maximumf %209, %211 : vector<8x128xf32>
    %213 = tpu.reciprocal %212 {approx = true} : vector<8x128xf32> -> vector<8x128xf32>
    %214 = arith.mulf %202, %213 : vector<8x128xf32>
    %215 = arith.mulf %202, %202 : vector<8x128xf32>
    %cst_95 = arith.constant 1.000000e+00 : f32
    %216 = vector.broadcast %cst_95 : f32 to vector<8x128xf32>
    %217 = arith.subf %216, %215 : vector<8x128xf32>
    %218 = arith.mulf %200, %217 : vector<8x128xf32>
    %219 = arith.mulf %214, %214 : vector<8x128xf32>
    %220 = arith.mulf %218, %219 : vector<8x128xf32>
    %221 = math.log %220 : vector<8x128xf32>
    %cst_96 = arith.constant 4.84420061 : f32
    %222 = vector.broadcast %cst_96 : f32 to vector<8x128xf32>
    %223 = arith.addf %221, %222 : vector<8x128xf32>
    %cst_97 = arith.constant 0.000000e+00 : f32
    %224 = vector.broadcast %cst_97 : f32 to vector<8x128xf32>
    %225 = arith.subf %224, %223 : vector<8x128xf32>
    %226 = arith.mulf %185, %210 : vector<8x128xf32>
    %227 = arith.mulf %124, %226 : vector<8x128xf32>
    %228 = arith.addf %118, %227 : vector<8x128xf32>
    %229 = arith.mulf %186, %210 : vector<8x128xf32>
    %230 = arith.mulf %125, %229 : vector<8x128xf32>
    %231 = arith.addf %119, %230 : vector<8x128xf32>
    %232 = arith.mulf %187, %210 : vector<8x128xf32>
    %233 = arith.mulf %126, %232 : vector<8x128xf32>
    %234 = arith.addf %120, %233 : vector<8x128xf32>
    %235 = arith.mulf %228, %228 : vector<8x128xf32>
    %236 = arith.mulf %231, %231 : vector<8x128xf32>
    %237 = arith.addf %235, %236 : vector<8x128xf32>
    %238 = arith.mulf %234, %234 : vector<8x128xf32>
    %239 = arith.addf %237, %238 : vector<8x128xf32>
    %cst_98 = arith.constant -5.000000e-01 : f32
    %240 = vector.broadcast %cst_98 : f32 to vector<8x128xf32>
    %241 = arith.mulf %240, %239 : vector<8x128xf32>
    %cst_99 = arith.constant -2.75681567 : f32
    %242 = vector.broadcast %cst_99 : f32 to vector<8x128xf32>
    %243 = arith.addf %241, %242 : vector<8x128xf32>
    %244 = arith.addf %243, %128 : vector<8x128xf32>
    %245 = arith.addf %244, %225 : vector<8x128xf32>
    %cst_100 = arith.constant 6.28318548 : f32
    %246 = vector.broadcast %cst_100 : f32 to vector<8x128xf32>
    %247 = arith.subf %246, %167 : vector<8x128xf32>
    %cst_101 = arith.constant 6.28318548 : f32
    %248 = vector.broadcast %cst_101 : f32 to vector<8x128xf32>
    %249 = arith.subf %167, %248 : vector<8x128xf32>
    %250 = arith.mulf %249, %171 : vector<8x128xf32>
    %251 = tpu.reciprocal %247 {approx = true} : vector<8x128xf32> -> vector<8x128xf32>
    %252 = arith.mulf %193, %251 : vector<8x128xf32>
    %253 = arith.mulf %252, %251 : vector<8x128xf32>
    %cst_102 = arith.constant 0.198943675 : f32
    %254 = vector.broadcast %cst_102 : f32 to vector<8x128xf32>
    %255 = arith.mulf %247, %254 : vector<8x128xf32>
    %cst_103 = arith.constant 0.000000e+00 : f32
    %cst_104 = arith.constant 0.999998986 : f32
    %256 = vector.broadcast %cst_103 : f32 to vector<8x128xf32>
    %257 = arith.maximumf %256, %255 : vector<8x128xf32>
    %258 = vector.broadcast %cst_104 : f32 to vector<8x128xf32>
    %259 = arith.minimumf %258, %257 : vector<8x128xf32>
    %260 = math.log1p %259 : vector<8x128xf32>
    %cst_105 = arith.constant 0.000000e+00 : f32
    %261 = vector.broadcast %cst_105 : f32 to vector<8x128xf32>
    %262 = arith.subf %261, %259 : vector<8x128xf32>
    %263 = math.log1p %262 : vector<8x128xf32>
    %264 = arith.subf %260, %263 : vector<8x128xf32>
    %cst_106 = arith.constant 5.000000e-01 : f32
    %265 = vector.broadcast %cst_106 : f32 to vector<8x128xf32>
    %266 = arith.mulf %265, %264 : vector<8x128xf32>
    %267 = arith.mulf %266, %251 : vector<8x128xf32>
    %268 = tpu.reciprocal %266 {approx = true} : vector<8x128xf32> -> vector<8x128xf32>
    %269 = arith.mulf %259, %268 : vector<8x128xf32>
    %270 = arith.mulf %259, %259 : vector<8x128xf32>
    %cst_107 = arith.constant 1.000000e+00 : f32
    %271 = vector.broadcast %cst_107 : f32 to vector<8x128xf32>
    %272 = arith.subf %271, %270 : vector<8x128xf32>
    %273 = arith.mulf %253, %272 : vector<8x128xf32>
    %274 = arith.mulf %269, %269 : vector<8x128xf32>
    %275 = arith.mulf %273, %274 : vector<8x128xf32>
    %276 = math.log %275 : vector<8x128xf32>
    %cst_108 = arith.constant 4.84420061 : f32
    %277 = vector.broadcast %cst_108 : f32 to vector<8x128xf32>
    %278 = arith.addf %276, %277 : vector<8x128xf32>
    %cst_109 = arith.constant 0.000000e+00 : f32
    %279 = vector.broadcast %cst_109 : f32 to vector<8x128xf32>
    %280 = arith.subf %279, %278 : vector<8x128xf32>
    %281 = arith.mulf %250, %267 : vector<8x128xf32>
    %282 = arith.mulf %185, %281 : vector<8x128xf32>
    %283 = arith.mulf %124, %282 : vector<8x128xf32>
    %284 = arith.addf %118, %283 : vector<8x128xf32>
    %285 = arith.mulf %186, %281 : vector<8x128xf32>
    %286 = arith.mulf %125, %285 : vector<8x128xf32>
    %287 = arith.addf %119, %286 : vector<8x128xf32>
    %288 = arith.mulf %187, %281 : vector<8x128xf32>
    %289 = arith.mulf %126, %288 : vector<8x128xf32>
    %290 = arith.addf %120, %289 : vector<8x128xf32>
    %291 = arith.mulf %284, %284 : vector<8x128xf32>
    %292 = arith.mulf %287, %287 : vector<8x128xf32>
    %293 = arith.addf %291, %292 : vector<8x128xf32>
    %294 = arith.mulf %290, %290 : vector<8x128xf32>
    %295 = arith.addf %293, %294 : vector<8x128xf32>
    %cst_110 = arith.constant -5.000000e-01 : f32
    %296 = vector.broadcast %cst_110 : f32 to vector<8x128xf32>
    %297 = arith.mulf %296, %295 : vector<8x128xf32>
    %cst_111 = arith.constant -2.75681567 : f32
    %298 = vector.broadcast %cst_111 : f32 to vector<8x128xf32>
    %299 = arith.addf %297, %298 : vector<8x128xf32>
    %300 = arith.addf %299, %128 : vector<8x128xf32>
    %301 = arith.addf %300, %280 : vector<8x128xf32>
    %cst_112 = arith.constant 5.02654839 : f32
    %302 = vector.broadcast %cst_112 : f32 to vector<8x128xf32>
    %303 = arith.cmpf olt, %247, %302 : vector<8x128xf32>
    %cst_113 = arith.constant -1.000000e+30 : f32
    %304 = vector.broadcast %cst_113 : f32 to vector<8x128xf32>
    %305 = arith.select %303, %301, %304 : vector<8x128xi1>, vector<8x128xf32>
    %306 = arith.maximumf %245, %305 : vector<8x128xf32>
    %307 = arith.subf %245, %305 : vector<8x128xf32>
    %308 = math.absf %307 : vector<8x128xf32>
    %cst_114 = arith.constant 0.000000e+00 : f32
    %309 = vector.broadcast %cst_114 : f32 to vector<8x128xf32>
    %310 = arith.subf %309, %308 : vector<8x128xf32>
    %311 = math.exp %310 : vector<8x128xf32>
    %312 = math.log1p %311 : vector<8x128xf32>
    %313 = arith.addf %306, %312 : vector<8x128xf32>
    %cst_115 = arith.constant 0.000000e+00 : f32
    %314 = vector.broadcast %cst_115 : f32 to vector<8x128xf32>
    %315 = arith.subf %314, %313 : vector<8x128xf32>
    %c0_116 = arith.constant 0 : index
    %c0_117 = arith.constant 0 : index
    %316 = vector.load %arg7[%c0_116, %c0_117] : memref<8x128xf32, #tpu.memory_space<vmem>>, vector<8x128xf32>
    tpu.vector_store %arg7[%c0_116, %c0_117], %315 {strides = array<i32>} : memref<8x128xf32, #tpu.memory_space<vmem>>, vector<8x128xf32>,
    return
  }
  func.func @transform_0(%arg0: i32) -> (i32, i32) {
    %c0_i32 = arith.constant 0 : i32
    %c0_i32_0 = arith.constant 0 : i32
    return %c0_i32, %arg0 : i32, i32
  }
  func.func @transform_1(%arg0: i32) -> (i32, i32, i32) {
    %c0_i32 = arith.constant 0 : i32
    %c0_i32_0 = arith.constant 0 : i32
    %c0_i32_1 = arith.constant 0 : i32
    return %c0_i32, %arg0, %c0_i32_0 : i32, i32, i32
  }
  func.func @transform_2(%arg0: i32) -> (i32, i32) {
    %c0_i32 = arith.constant 0 : i32
    %c0_i32_0 = arith.constant 0 : i32
    %c0_i32_1 = arith.constant 0 : i32
    return %c0_i32, %c0_i32_0 : i32, i32
  }
  func.func @transform_3(%arg0: i32) -> (i32, i32) {
    %c0_i32 = arith.constant 0 : i32
    %c0_i32_0 = arith.constant 0 : i32
    %c0_i32_1 = arith.constant 0 : i32
    return %c0_i32, %c0_i32_0 : i32, i32
  }
  func.func @transform_4(%arg0: i32) -> (i32, i32) {
    %c0_i32 = arith.constant 0 : i32
    %c0_i32_0 = arith.constant 0 : i32
    %c0_i32_1 = arith.constant 0 : i32
    return %c0_i32, %c0_i32_0 : i32, i32
  }
  func.func @transform_5(%arg0: i32) -> (i32, i32) {
    %c0_i32 = arith.constant 0 : i32
    %c0_i32_0 = arith.constant 0 : i32
    %c0_i32_1 = arith.constant 0 : i32
    return %c0_i32, %c0_i32_0 : i32, i32
  }
  func.func @transform_6(%arg0: i32) -> (i32, i32) {
    %c0_i32 = arith.constant 0 : i32
    %c0_i32_0 = arith.constant 0 : i32
    return %arg0, %c0_i32 : i32, i32
  }
}

</mosaic_0001>

<bundles_post_ra>
// kernel: tpu_custom_call.1
= control target key start
LH: loop header
LB: loop body
LE: loop exit
PB: predicated region body
PF: predicated region fallthrough
CT: control target
= control target key end

     0   :  { %11 = vsyncpa [#allocation4], 0  ;;  %s1439_s0 = inlined_call_operand.hbm [shape: f32[16,1024], index: 0, kind: input, shape index: {}]   ;;  %s1440_s1 = inlined_call_operand.vmem [shape: f32[9,8,128], index: 1, kind: input, shape index: {}]   ;;  %s1441_s2 = inlined_call_operand.vmem [shape: f32[32,16], index: 2, kind: input, shape index: {}]   ;;  %s1442_s3 = inlined_call_operand.vmem [shape: f32[32,1], index: 3, kind: input, shape index: {}]   ;;  %s1443_s4 = inlined_call_operand.vmem [shape: f32[6,32], index: 4, kind: input, shape index: {}]   ;;  %s1444_s5 = inlined_call_operand.vmem [shape: f32[6,1], index: 5, kind: input, shape index: {}]   ;;  %s1445_s6 = inlined_call_operand.hbm [shape: f32[8,128], index: 6, kind: output, shape index: {}]  }
   0x1   :  { %12 = vsyncpa [#allocation5], 0  ;;  %s1131_s21 = smov [#allocation3]   ;;  %s1083_s25 = scalar_lea.hbm %s1439_s0, 2048 }
   0x2   :  { %s18_s22 = sshll.u32 %s1131_s21, 4  ;;  %p1084_p0 = scmp.ne.s32.totalorder %s1439_s0, %s1083_s25  ;;  %s19_s22 = int_to_ptr.vmem [resolvable:$true] %s18_s22 }
   0x3   :  { %p1087_p1 = scmp.lt.u32.totalorder %s1083_s25, %s1439_s0 }
   0x5   :  { %p1089_p2 = pnand %p1087_p1, %p1084_p0 }
   0x7   :  { %1092 = shalt.err (!%p1089_p2)
}
   0x8   :  { %s1093_s30 = scalar_lea.vmem %s19_s22, 2048  ;;  %p1098_p4 = scmp.lt.s32.totalorder %s19_s22, %s19_s22 }
   0x9   :  { %p1094_p3 = scmp.ne.s32.totalorder %s19_s22, %s1093_s30  ;;  %p1099_p5 = scmp.lt.s32.totalorder %s1093_s30, %s1093_s30 }
   0xb   :  { %p1100_p6 = por %p1099_p5, %p1098_p4 }
   0xd   :  { %p1101_p7 = pnand %p1100_p6, %p1094_p3 }
   0xf   :  { %1104 = shalt.err (!%p1101_p7)
}
  0x10   :  { %s1132_s7 = smov 1024   ;;  %s1133_s8 = smov 64  }
  0x11   :  { %24 = dma.hbm_to_vmem [thread:$0]  %s1439_s0, 2048, %s19_s22, [#allocation4], %s1132_s7, %s1132_s7, %s1133_s8  }
  0x12   :  { %1127 = dma.done.wait [#allocation4], 2048  }
  0x13   :  { %1128 = vsyncadd [#allocation4], 4294965248  ;;  %v1134_v0 = vmov 0.0   ;;  %v1135_v1 = vmov 0   ;;  %v40_v2 = vld [vmem:[#allocation3 + $0x8] sm:$0xff]  ;;  %v42_v4 = vld [vmem:[#allocation3 + $0x18] sm:$0xff] }
  0x14   :  { %160 = vmatprep.mubr.f32.mxu0 %v1134_v0  ;;  %249 = vmatprep.mubr.f32.mxu1 %v1134_v0  ;;  %v48_v3 = vld [vmem:[#allocation3 + $0x48] sm:$0xff]  ;;  %v50_v6 = vld [vmem:[#allocation3 + $0x58] sm:$0xff]  ;;  %v39_v7 = vld [vmem:[#allocation3] sm:$0xff]  ;;  %vm83_vm0 = vcmask 130048   ;;  %vm492_vm1 = vcmask 261120  }
  0x15   :  { %1013 = vset.pattern.permute.xlu0 %v1135_v1  ;;  %1014 = vset.pattern.permute.xlu1 %v1135_v1  ;;  %v990_v5 = vpack.c.bf16 %v48_v3, %v40_v2  ;;  %v47_v8 = vld [vmem:[#allocation3 + $0x40] sm:$0xff]  ;;  %v994_v9 = vpack.c.bf16 %v50_v6, %v42_v4  ;;  %v41_v11 = vld [vmem:[#allocation3 + $0x10] sm:$0xff]  ;;  %v44_v15 = vld [vmem:[#allocation3 + $0x28] sm:$0xff] }
  0x16   :  { %v992_v10 = vpack.c.bf16 %v47_v8, %v39_v7  ;;  %v49_v12 = vld [vmem:[#allocation3 + $0x50] sm:$0xff]  ;;  %v52_v16 = vld [vmem:[#allocation3 + $0x68] sm:$0xff]  ;;  %v46_v17 = vld [vmem:[#allocation3 + $0x38] sm:$0xff] }
  0x17   :  { %v55_v13 = vld [vmem:[%s1441_s2] sm:$0xff]  ;;  %991 = vmatprep.subr.bf16.mxu0 %v990_v5  ;;  %v996_v14 = vpack.c.bf16 %v49_v12, %v41_v11  ;;  %995 = vmatprep.subr.bf16.mxu1 %v994_v9  ;;  %v998_v18 = vpack.c.bf16 %v52_v16, %v44_v15  ;;  %v54_v19 = vld [vmem:[#allocation3 + $0x78] sm:$0xff]  ;;  %v43_v20 = vld [vmem:[#allocation3 + $0x20] sm:$0xff] }
  0x18   :  { %993 = vmatpush1.bf16.msra.mxu0 %v992_v10  ;;  %v51_v21 = vld [vmem:[#allocation3 + $0x60] sm:$0xff]  ;;  %v1002_v22 = vpack.c.bf16 %v54_v19, %v46_v17  ;;  %v45_v24 = vld [vmem:[#allocation3 + $0x30] sm:$0xff]  ;;  %v56_v28 = vld [vmem:[%s1441_s2 + $0x8] sm:$0xff] }
  0x19   :  { %997 = vmatpush1.bf16.msra.mxu1 %v996_v14  ;;  %v1000_v23 = vpack.c.bf16 %v51_v21, %v43_v20  ;;  %v53_v25 = vld [vmem:[#allocation3 + $0x70] sm:$0xff]  ;;  %999 = vmatprep.subr.bf16.mxu0 %v998_v18  ;;  %v61_v29 = vld [vmem:[%s1442_s3 + $0x10] sm:$0xff]  ;;  %v60_v30 = vld [vmem:[%s1442_s3 + $0x8] sm:$0xff] }
  0x1a   :  { %v1004_v26 = vpack.c.bf16 %v53_v25, %v45_v24  ;;  %1003 = vmatprep.subr.bf16.mxu1 %v1002_v22  ;;  %v59_v27 = vld [vmem:[%s1442_s3] sm:$0xff]  ;;  %75 = vperm.xlu1 %1014, %v61_v29   ;;  %v57_v31 = vld [vmem:[%s1441_s2 + $0x10] sm:$0xff]  ;;  %v62_v32 = vld [vmem:[%s1442_s3 + $0x18] sm:$0xff] }
  0x1b   :  { %967 = vmatmul.mubr.msk.f32.vlgmr.msra.gmra.mrb[0].mxu0 %vm83_vm0, %v55_v13  ;;  %65 = vperm.xlu0 %1013, %v59_v27   ;;  %v486_v33 = vld [vmem:[%s1444_s5] sm:$0x3f]  ;;  %v58_v34 = vld [vmem:[%s1441_s2 + $0x18] sm:$0xff]  ;;  %v728_v21 = vld [vmem:[%s1440_s1 + $0x30] sm:$0xff] }
  0x1c   :  { %971 = vmatmul.mubr.msk.f32.vlgmr.msra.gmra.mrb[0].mxu1 %vm83_vm0, %v55_v13  ;;  %1001 = vmatpush1.bf16.msra.mxu0 %v1000_v23  ;;  %v729_v22 = vld [vmem:[%s1440_s1 + $0x38] sm:$0xff] }
  0x1d   :  { %1005 = vmatpush1.bf16.msra.mxu1 %v1004_v26  ;;  %166 = vmatprep.mubr.f32.mxu0 %v1134_v0  ;;  %v734_v29 = vadd.f32 %v729_v22, %v728_v21 }
  0x1e   :  { %255 = vmatprep.mubr.f32.mxu1 %v1134_v0  ;;  %80 = vperm.xlu1 %1014, %v62_v32  }
  0x1f   :  { %968 = vmatmul.mubr.msk.f32.gmra.mrb[2].mxu0 %vm83_vm0, %v56_v28  ;;  %70 = vperm.xlu0 %1013, %v60_v30  }
  0x20   :  { %972 = vmatmul.mubr.msk.f32.gmra.mrb[2].mxu1 %vm83_vm0, %v56_v28  ;;  %172 = vmatprep.mubr.f32.mxu0 %v1134_v0 }
  0x21   :  { %261 = vmatprep.mubr.f32.mxu1 %v1134_v0 }
  0x23   :  { %969 = vmatmul.mubr.msk.f32.gmra.mrb[4].mxu0 %vm83_vm0, %v57_v31  ;;  %489 = vperm.xlu0 %1013, %v486_v33  }
  0x24   :  { %973 = vmatmul.mubr.msk.f32.gmra.mrb[4].mxu1 %vm83_vm0, %v57_v31  ;;  %178 = vmatprep.mubr.f32.mxu0 %v1134_v0 }
  0x25   :  { %267 = vmatprep.mubr.f32.mxu1 %v1134_v0 }
  0x27   :  { %970 = vmatmul.mubr.msk.f32.gmra.mrb[6].mxu0 %vm83_vm0, %v58_v34 }
  0x28   :  { %974 = vmatmul.mubr.msk.f32.gmra.mrb[6].mxu1 %vm83_vm0, %v58_v34  ;;  %338 = vmatprep.mubr.f32.mxu0 %v1134_v0 }
  0x29   :  { %427 = vmatprep.mubr.f32.mxu1 %v1134_v0 }
  0x2b   :  { %975 = vmatmul.mubr.msk.f32.vlgmr.msra.gmra.mrb[8].mxu0 %vm83_vm0, %v55_v13 }
  0x2c   :  { %979 = vmatmul.mubr.msk.f32.vlgmr.msra.gmra.mrb[8].mxu1 %vm83_vm0, %v55_v13  ;;  %344 = vmatprep.mubr.f32.mxu0 %v1134_v0 }
  0x2d   :  { %433 = vmatprep.mubr.f32.mxu1 %v1134_v0 }
  0x2f   :  { %976 = vmatmul.mubr.msk.f32.gmra.mrb[10].mxu0 %vm83_vm0, %v56_v28 }
  0x30   :  { %980 = vmatmul.mubr.msk.f32.gmra.mrb[10].mxu1 %vm83_vm0, %v56_v28  ;;  %350 = vmatprep.mubr.f32.mxu0 %v1134_v0 }
  0x31   :  { %439 = vmatprep.mubr.f32.mxu1 %v1134_v0 }
  0x33   :  { %977 = vmatmul.mubr.msk.f32.gmra.mrb[12].mxu0 %vm83_vm0, %v57_v31 }
  0x34   :  { %981 = vmatmul.mubr.msk.f32.gmra.mrb[12].mxu1 %vm83_vm0, %v57_v31  ;;  %356 = vmatprep.mubr.f32.mxu0 %v1134_v0 }
  0x35   :  { %445 = vmatprep.mubr.f32.mxu1 %v1134_v0 }
  0x37   :  { %978 = vmatmul.mubr.msk.f32.gmra.mrb[14].mxu0 %vm83_vm0, %v58_v34 }
  0x38   :  { %982 = vmatmul.mubr.msk.f32.gmra.mrb[14].mxu1 %vm83_vm0, %v58_v34  ;;  %528 = vmatprep.mubr.bf16.mxu0 %v1135_v1 }
  0x39   :  { %569 = vmatprep.mubr.bf16.mxu1 %v1135_v1 }
  0x99   :  { %v1252_v42 = vpop.permute.xlu1 %75 }
  0x9a   :  { %v1248_v35 = vpop.permute.xlu0 %65 }
  0x9d   :  { %v1262_v62 = vpop.permute.xlu1 %80 }
  0x9e   :  { %v1250_v39 = vpop.permute.xlu0 %70 }
  0xee   :  { %v162_v36 = vpop.f32.mrb[0].mxu0 }
  0xef   :  { %v251_v37 = vpop.f32.mrb[0].mxu1  ;;  %v164_v38 = vpop.f32.mrb[1].mxu0  ;;  %v163_v43 = vadd.f32 %v162_v36, %v1248_v35 }
  0xf0   :  { %v253_v40 = vpop.f32.mrb[1].mxu1  ;;  %v252_v47 = vadd.f32 %v251_v37, %v1248_v35  ;;  %v165_v48 = vadd.f32 %v164_v38, %v1248_v35  ;;  %v730_v37 = vld [vmem:[%s1440_s1 + $0x40] sm:$0xff] }
  0xf1   :  { %v254_v52 = vadd.f32 %v253_v40, %v1248_v35 }
  0xf2   :  { %v168_v41 = vpop.f32.mrb[2].mxu0 }
  0xf3   :  { %v169_v44 = vadd.f32 %v168_v41, %v1250_v39  ;;  %v257_v45 = vpop.f32.mrb[2].mxu1  ;;  %v170_v46 = vpop.f32.mrb[3].mxu0 }
  0xf4   :  { %v258_v49 = vadd.f32 %v257_v45, %v1250_v39  ;;  %v171_v50 = vadd.f32 %v170_v46, %v1250_v39  ;;  %v259_v51 = vpop.f32.mrb[3].mxu1 }
  0xf5   :  { %v452_v53 = vpack.c.bf16 %v169_v44, %v163_v43  ;;  %v260_v54 = vadd.f32 %v259_v51, %v1250_v39  ;;  %v735_v51 = vadd.f32 %v734_v29, %v730_v37 }
  0xf6   :  { %v454_v55 = vpack.c.bf16 %v258_v49, %v252_v47  ;;  %v453_v56 = vpack.c.bf16 %v171_v50, %v165_v48  ;;  %v174_v57 = vpop.f32.mrb[4].mxu0 }
  0xf7   :  { %v455_v58 = vpack.c.bf16 %v260_v54, %v254_v52  ;;  %v263_v59 = vpop.f32.mrb[4].mxu1  ;;  %v176_v60 = vpop.f32.mrb[5].mxu0  ;;  %1015 = vtanh.bf16 %v452_v53  ;;  %v175_v2 = vadd.f32 %v174_v57, %v1252_v42 }
  0xf8   :  { %v265_v61 = vpop.f32.mrb[5].mxu1  ;;  %1017 = vtanh.bf16 %v453_v56  ;;  %v264_v6 = vadd.f32 %v263_v59, %v1252_v42  ;;  %v177_v7 = vadd.f32 %v176_v60, %v1252_v42 }
  0xf9   :  { %1019 = vtanh.bf16 %v455_v58  ;;  %v266_v11 = vadd.f32 %v265_v61, %v1252_v42  ;;  %v987_v58 = vadd.f32 -1.0, %v735_v51 }
  0xfa   :  { %v180_v63 = vpop.f32.mrb[6].mxu0  ;;  %1021 = vtanh.bf16 %v454_v55 }
  0xfb   :  { %v181_v3 = vadd.f32 %v180_v63, %v1262_v62  ;;  %v269_v4 = vpop.f32.mrb[6].mxu1  ;;  %v182_v5 = vpop.f32.mrb[7].mxu0 }
  0xfc   :  { %v270_v8 = vadd.f32 %v269_v4, %v1262_v62  ;;  %v183_v9 = vadd.f32 %v182_v5, %v1262_v62  ;;  %v271_v10 = vpop.f32.mrb[7].mxu1 }
  0xfd   :  { %v460_v12 = vpack.c.bf16 %v181_v3, %v175_v2  ;;  %v272_v13 = vadd.f32 %v271_v10, %v1262_v62 }
  0xfe   :  { %v462_v14 = vpack.c.bf16 %v270_v8, %v264_v6  ;;  %v461_v15 = vpack.c.bf16 %v183_v9, %v177_v7  ;;  %v340_v16 = vpop.f32.mrb[8].mxu0 }
  0xff   :  { %v463_v17 = vpack.c.bf16 %v272_v13, %v266_v11  ;;  %v429_v18 = vpop.f32.mrb[8].mxu1  ;;  %v342_v19 = vpop.f32.mrb[9].mxu0  ;;  %1023 = vtanh.bf16 %v460_v12  ;;  %v341_v25 = vadd.f32 %v340_v16, %v1248_v35  ;;  %v737_v13 = vmul.f32 0.5, %v987_v58 }
 0x100   :  { %v431_v20 = vpop.f32.mrb[9].mxu1  ;;  %1025 = vtanh.bf16 %v461_v15  ;;  %v430_v31 = vadd.f32 %v429_v18, %v1248_v35  ;;  %v343_v32 = vadd.f32 %v342_v19, %v1248_v35 }
 0x101   :  { %1027 = vtanh.bf16 %v463_v17  ;;  %v432_v40 = vadd.f32 %v431_v20, %v1248_v35 }
 0x102   :  { %v346_v23 = vpop.f32.mrb[10].mxu0  ;;  %v1016_v24 = vpop.eup %1015  ;;  %1029 = vtanh.bf16 %v462_v14 }
 0x103   :  { %v347_v26 = vadd.f32 %v346_v23, %v1250_v39  ;;  %v435_v27 = vpop.f32.mrb[10].mxu1  ;;  %v348_v28 = vpop.f32.mrb[11].mxu0 }
 0x104   :  { %v1018_v30 = vpop.eup %1017  ;;  %v436_v33 = vadd.f32 %v435_v27, %v1250_v39  ;;  %v349_v34 = vadd.f32 %v348_v28, %v1250_v39  ;;  %v437_v36 = vpop.f32.mrb[11].mxu1 }
 0x105   :  { %v1020_v38 = vpop.eup %1019  ;;  %v456_v41 = vpack.c.bf16 %v347_v26, %v341_v25  ;;  %v438_v43 = vadd.f32 %v437_v36, %v1250_v39  ;;  %496 = vmatprep.subr.bf16.mxu0 %v1018_v30  ;;  %v484_v39 = vld [vmem:[%s1443_s4] sm:$0x3f] }
 0x106   :  { %v1022_v44 = vpop.eup %1021  ;;  %v458_v45 = vpack.c.bf16 %v436_v33, %v430_v31  ;;  %v457_v46 = vpack.c.bf16 %v349_v34, %v343_v32  ;;  %537 = vmatprep.subr.bf16.mxu1 %v1020_v38  ;;  %497 = vmatpush1.bf16.msra.mxu0 %v1016_v24  ;;  %v352_v47 = vpop.f32.mrb[12].mxu0  ;;  %v485_v8 = vpack.c.bf16 %v484_v39, %v484_v39 }
 0x107   :  { %v459_v48 = vpack.c.bf16 %v438_v43, %v432_v40  ;;  %538 = vmatpush1.bf16.msra.mxu1 %v1022_v44  ;;  %v441_v49 = vpop.f32.mrb[12].mxu1  ;;  %v354_v50 = vpop.f32.mrb[13].mxu0  ;;  %1031 = vtanh.bf16 %v456_v41  ;;  %v353_v54 = vadd.f32 %v352_v47, %v1252_v42 }
 0x108   :  { %v443_v52 = vpop.f32.mrb[13].mxu1  ;;  %1033 = vtanh.bf16 %v457_v46  ;;  %v442_v60 = vadd.f32 %v441_v49, %v1252_v42  ;;  %v355_v61 = vadd.f32 %v354_v50, %v1252_v42 }
 0x109   :  { %1035 = vtanh.bf16 %v459_v48  ;;  %v444_v5 = vadd.f32 %v443_v52, %v1252_v42 }
 0x10a   :  { %v358_v35 = vpop.f32.mrb[14].mxu0  ;;  %v1024_v53 = vpop.eup %1023  ;;  %1037 = vtanh.bf16 %v458_v45 }
 0x10b   :  { %v359_v55 = vadd.f32 %v358_v35, %v1262_v62  ;;  %v447_v56 = vpop.f32.mrb[14].mxu1  ;;  %v360_v57 = vpop.f32.mrb[15].mxu0 }
 0x10c   :  { %v1026_v59 = vpop.eup %1025  ;;  %v448_v63 = vadd.f32 %v447_v56, %v1262_v62  ;;  %v361_v2 = vadd.f32 %v360_v57, %v1262_v62  ;;  %v449_v3 = vpop.f32.mrb[15].mxu1 }
 0x10d   :  { %v1028_v4 = vpop.eup %1027  ;;  %v464_v6 = vpack.c.bf16 %v359_v55, %v353_v54  ;;  %v450_v7 = vadd.f32 %v449_v3, %v1262_v62  ;;  %498 = vmatprep.subr.bf16.mxu0 %v1026_v59  ;;  %v1304_v62 = vclamps-f32 %v737_v13, 0.9999999 }
 0x10e   :  { %v1030_v9 = vpop.eup %1029  ;;  %v466_v10 = vpack.c.bf16 %v448_v63, %v442_v60  ;;  %v465_v11 = vpack.c.bf16 %v361_v2, %v355_v61  ;;  %539 = vmatprep.subr.bf16.mxu1 %v1028_v4  ;;  %499 = vmatpush1.bf16.msra.mxu0 %v1024_v53  ;;  %v1136_v60 = vmov 0.7853982  }
 0x10f   :  { %v467_v12 = vpack.c.bf16 %v450_v7, %v444_v5  ;;  %540 = vmatpush1.bf16.msra.mxu1 %v1030_v9  ;;  %1039 = vtanh.bf16 %v464_v6  ;;  %v740_v17 = vmul.f32 %v1304_v62, %v1304_v62  ;;  %v750_v28 = vand.u32 2147483647, %v1304_v62 }
 0x110   :  { %1041 = vtanh.bf16 %v465_v11  ;;  %vm780_vm5 = vcmp.lt.s32.totalorder %v1304_v62, 0  ;;  %vm777_vm6 = vcmp.lt.f32.partialorder %v1304_v62, 0.0  ;;  %vm784_vm8 = vcmp.ne.f32.partialorder %v1304_v62, %v1304_v62 }
 0x111   :  { %983 = vmatmul.mubr.msk.bf16.vlgmr.msra.gmra.mrb[16].mxu0 %vm492_vm1, %v485_v8  ;;  %1043 = vtanh.bf16 %v467_v12  ;;  %v741_v19 = vsub.f32 1.0, %v740_v17  ;;  %v781_v56 = vsel %vm780_vm5, 3.1415927, %v1134_v0  ;;  %vm790_vm11 = vcmp.eq.s32.totalorder %v750_v28, inf }
 0x112   :  { %984 = vmatmul.mubr.msk.bf16.vlgmr.msra.gmra.mrb[16].mxu1 %vm492_vm1, %v485_v8  ;;  %610 = vmatprep.mubr.bf16.mxu0 %v1135_v1  ;;  %v1032_v42 = vpop.eup %1031  ;;  %1045 = vtanh.bf16 %v466_v10  ;;  %v789_v61 = vsel %vm777_vm6, 2.3561945, %v1136_v60 }
 0x113   :  { %651 = vmatprep.mubr.bf16.mxu1 %v1135_v1  ;;  %v1034_v14 = vpop.eup %1033  ;;  %v742_v1 = vmax.f32 %v741_v19, 1e-12 }
 0x114   :  { %v1036_v15 = vpop.eup %1035  ;;  %578 = vmatprep.subr.bf16.mxu0 %v1034_v14 }
 0x115   :  { %v1038_v16 = vpop.eup %1037  ;;  %619 = vmatprep.subr.bf16.mxu1 %v1036_v15  ;;  %579 = vmatpush1.bf16.msra.mxu0 %v1032_v42  ;;  %1047 = vrsqrt.f32 %v742_v1  ;;  %vm745_vm2 = vcmp.eq.f32.partialorder %v742_v1, inf  ;;  %v748_v25 = vand.u32 2147483648, %v742_v1  ;;  %vm747_vm3 = vcmp.eq.f32.partialorder %v742_v1, 0.0 }
 0x116   :  { %620 = vmatpush1.bf16.msra.mxu1 %v1038_v16 }
 0x11a   :  { %v1040_v18 = vpop.eup %1039 }
 0x11b   :  { %v1042_v20 = vpop.eup %1041 }
 0x11c   :  { %v1044_v21 = vpop.eup %1043  ;;  %580 = vmatprep.subr.bf16.mxu0 %v1042_v20 }
 0x11d   :  { %v1046_v22 = vpop.eup %1045  ;;  %621 = vmatprep.subr.bf16.mxu1 %v1044_v21  ;;  %581 = vmatpush1.bf16.msra.mxu0 %v1040_v18 }
 0x11e   :  { %622 = vmatpush1.bf16.msra.mxu1 %v1046_v22 }
 0x11f   :  { %v1048_v23 = vpop.eup %1047 }
 0x120   :  { %985 = vmatmul.mubr.msk.bf16.vlgmr.msra.gmra.mrb[20].mxu0 %vm492_vm1, %v485_v8  ;;  %v744_v24 = vmul.f32 %v1048_v23, %v742_v1 }
 0x121   :  { %986 = vmatmul.mubr.msk.bf16.vlgmr.msra.gmra.mrb[20].mxu1 %vm492_vm1, %v485_v8 }
 0x122   :  { %v746_v26 = vsel %vm745_vm2, %v742_v1, %v744_v24 }
 0x123   :  { %v1310_v27 = vsel %vm747_vm3, %v748_v25, %v746_v26 }
 0x124   :  { %v751_v29 = vand.u32 2147483647, %v1310_v27  ;;  %vm782_vm7 = vcmp.eq.f32.partialorder %v1310_v27, 0.0  ;;  %vm785_vm9 = vcmp.ne.f32.partialorder %v1310_v27, %v1310_v27  ;;  %v795_v0 = vand.u32 2147483648, %v1310_v27 }
 0x125   :  { %vm786_vm10 = vmor %vm784_vm8, %vm785_vm9 }
 0x126   :  { %v753_v30 = vmax.f32 %v750_v28, %v751_v29  ;;  %v752_v31 = vmin.f32 %v750_v28, %v751_v29  ;;  %vm774_vm4 = vcmp.gt.f32.partialorder %v751_v29, %v750_v28  ;;  %vm791_vm12 = vcmp.eq.s32.totalorder %v751_v29, inf }
 0x127   :  { %vm792_vm13 = vmand %vm790_vm11, %vm791_vm12 }
 0x128   :  { %1049 = vrcp.f32 %v753_v30 }
 0x132   :  { %v1050_v32 = vpop.eup %1049 }
 0x133   :  { %v755_v33 = vmul.f32 %v1050_v32, %v752_v31 }
 0x135   :  { %v756_v34 = vmul.f32 %v755_v33, %v755_v33 }
 0x137   :  { %v757_v36 = vmul.f32 0.002785687, %v756_v34 }
 0x139   :  { %v758_v37 = vadd.f32 -0.015866, %v757_v36 }
 0x13b   :  { %v759_v38 = vmul.f32 %v758_v37, %v756_v34 }
 0x13d   :  { %v760_v40 = vadd.f32 0.04247222, %v759_v38 }
 0x13f   :  { %v761_v41 = vmul.f32 %v760_v40, %v756_v34 }
 0x141   :  { %v762_v43 = vadd.f32 -0.074975304, %v761_v41 }
 0x143   :  { %v763_v44 = vmul.f32 %v762_v43, %v756_v34 }
 0x145   :  { %v764_v45 = vadd.f32 0.1064488, %v763_v44 }
 0x147   :  { %v765_v46 = vmul.f32 %v764_v45, %v756_v34  ;;  %v725_v45 = vld [vmem:[%s1440_s1 + $0x18] sm:$0xff] }
 0x149   :  { %v766_v47 = vadd.f32 -0.14207031, %v765_v46 }
 0x14b   :  { %v767_v48 = vmul.f32 %v766_v47, %v756_v34 }
 0x14d   :  { %v768_v49 = vadd.f32 0.19993454, %v767_v48  ;;  %v811_v48 = vmul.f32 2.0, %v1304_v62 }
 0x14f   :  { %v769_v50 = vmul.f32 %v768_v49, %v756_v34 }
 0x151   :  { %v770_v51 = vadd.f32 -0.33333147, %v769_v50 }
 0x153   :  { %v771_v52 = vmul.f32 %v770_v51, %v756_v34  ;;  %v1360_v51 = vpop.permute.xlu0 %489 }
 0x155   :  { %v772_v35 = vmul.f32 %v771_v52, %v755_v33 }
 0x157   :  { %v773_v39 = vadd.f32 %v772_v35, %v755_v33 }
 0x159   :  { %v775_v53 = vsub.f32 1.5707964, %v773_v39 }
 0x15b   :  { %v776_v54 = vsel %vm774_vm4, %v775_v53, %v773_v39 }
 0x15c   :  { %v778_v55 = vsub.f32 3.1415927, %v776_v54 }
 0x15e   :  { %v779_v57 = vsel %vm777_vm6, %v778_v55, %v776_v54 }
 0x15f   :  { %v783_v58 = vsel %vm782_vm7, %v781_v56, %v779_v57 }
 0x160   :  { %v787_v59 = vsel %vm786_vm10, nan, %v783_v58 }
 0x161   :  { %v793_v63 = vsel %vm792_vm13, %v789_v61, %v787_v59 }
 0x162   :  { %v794_v2 = vand.u32 2147483647, %v793_v63  ;;  %v812_v63 = vsub.f32 2.0, %v811_v48 }
 0x164   :  { %v1323_v3 = vor.u32 %v795_v0, %v794_v2 }
 0x166   :  { %v1326_v4 = vsub.f32 6.2831855, %v1323_v3  ;;  %v1329_v5 = vmul.f32 0.19894367, %v1323_v3  ;;  %v798_v37 = vmax.f32 %v1323_v3, 1e-06 }
 0x167   :  { %vm800_vm2 = vcmp.lt.f32.partialorder %v1323_v3, 0.001  ;;  %v989_v48 = vadd.f32 -6.2831855, %v1323_v3 }
 0x168   :  { %v877_v6 = vmul.f32 0.19894367, %v1326_v4  ;;  %v828_v7 = vsub.f32 0.0, %v1329_v5  ;;  %v819_v9 = vadd.f32 1.0, %v1329_v5  ;;  %v822_v14 = vmul.f32 -0.5, %v1329_v5 }
 0x169   :  { %v825_v20 = vand.u32 2147483647, %v1329_v5  ;;  %vm932_vm3 = vcmp.lt.f32.partialorder %v1326_v4, 5.0265484 }
 0x16a   :  { %v878_v8 = vmax.f32 %v877_v6, 0.0  ;;  %v829_v10 = vadd.f32 1.0, %v828_v7  ;;  %1051 = vlog2.f32 %v819_v9  ;;  %v832_v15 = vmul.f32 -0.5, %v828_v7 }
 0x16b   :  { %v823_v17 = vadd.f32 1.0, %v822_v14  ;;  %v835_v21 = vand.u32 2147483647, %v828_v7  ;;  %vm826_vm14 = vcmp.lt.f32.partialorder %v825_v20, 0.0004427343  ;;  %v797_v6 = vmul.f32 %v1323_v3, %v1323_v3 }
 0x16c   :  { %v1334_v11 = vmin.f32 %v878_v8, 0.999999  ;;  %1053 = vlog2.f32 %v829_v10  ;;  %v833_v18 = vadd.f32 1.0, %v832_v15  ;;  %v813_v8 = vmax.f32 %v812_v63, 1e-12 }
 0x16d   :  { %v824_v24 = vmul.f32 %v823_v17, %v1329_v5  ;;  %vm836_vm15 = vcmp.lt.f32.partialorder %v835_v21, 0.0004427343  ;;  %v801_v10 = vmul.f32 0.083333336, %v797_v6 }
 0x16e   :  { %v889_v12 = vsub.f32 0.0, %v1334_v11  ;;  %v880_v13 = vadd.f32 1.0, %v1334_v11  ;;  %v883_v22 = vmul.f32 -0.5, %v1334_v11  ;;  %v834_v26 = vmul.f32 %v833_v18, %v828_v7 }
 0x16f   :  { %v886_v34 = vand.u32 2147483647, %v1334_v11  ;;  %v803_v7 = vmul.f32 2.0, %v1310_v27  ;;  %v814_v15 = vsub.f32 1.0, %v801_v10 }
 0x170   :  { %v890_v42 = vadd.f32 1.0, %v889_v12  ;;  %1055 = vlog2.f32 %v880_v13  ;;  %v893_v1 = vmul.f32 -0.5, %v889_v12  ;;  %v884_v31 = vadd.f32 1.0, %v883_v22 }
 0x171   :  { %v896_v36 = vand.u32 2147483647, %v889_v12  ;;  %vm1345_vm0 = vcmp.lt.f32.partialorder %v886_v34, 0.0004427343 }
 0x172   :  { %1057 = vlog2.f32 %v890_v42  ;;  %v894_v32 = vadd.f32 1.0, %v893_v1  ;;  %v885_v41 = vmul.f32 %v884_v31, %v1334_v11  ;;  %v844_v42 = vmul.f32 %v1329_v5, %v1329_v5 }
 0x173   :  { %vm1349_vm1 = vcmp.lt.f32.partialorder %v896_v36, 0.0004427343  ;;  %1059 = vrcp.f32 %v798_v37 }
 0x174   :  { %v1052_v16 = vpop.eup %1051  ;;  %v895_v44 = vmul.f32 %v894_v32, %v889_v12  ;;  %1061 = vrcp.f32 %v1326_v4  ;;  %v804_v12 = vmax.f32 %v803_v7, 1e-06  ;;  %v904_v32 = vmul.f32 %v1334_v11, %v1334_v11 }
 0x175   :  { %v821_v23 = vmul.f32 0.6931472, %v1052_v16 }
 0x176   :  { %v1054_v19 = vpop.eup %1053 }
 0x177   :  { %v831_v25 = vmul.f32 0.6931472, %v1054_v19  ;;  %v827_v29 = vsel %vm826_vm14, %v824_v24, %v821_v23  ;;  %v845_v24 = vsub.f32 1.0, %v844_v42 }
 0x179   :  { %v837_v30 = vsel %vm836_vm15, %v834_v26, %v831_v25 }
 0x17a   :  { %v1056_v28 = vpop.eup %1055  ;;  %v838_v38 = vsub.f32 %v827_v29, %v837_v30 }
 0x17b   :  { %v882_v40 = vmul.f32 0.6931472, %v1056_v28 }
 0x17c   :  { %v1058_v33 = vpop.eup %1057  ;;  %v1353_v47 = vmul.f32 0.5, %v838_v38 }
 0x17d   :  { %v892_v43 = vmul.f32 0.6931472, %v1058_v33  ;;  %v888_v49 = vsel %vm1345_vm0, %v885_v41, %v882_v40  ;;  %v1373_v9 = vpop.eup %1059  ;;  %v905_v40 = vsub.f32 1.0, %v904_v32 }
 0x17e   :  { %v841_v62 = vmax.f32 %v1353_v47, 1e-06  ;;  %v815_v13 = vmul.f32 %v1373_v9, %v813_v8  ;;  %v1379_v14 = vpop.eup %1061 }
 0x17f   :  { %v898_v50 = vsel %vm1349_vm1, %v895_v44, %v892_v43  ;;  %v875_v25 = vmul.f32 %v1379_v14, %v813_v8  ;;  %v722_v43 = vld [vmem:[%s1440_s1] sm:$0xff]  ;;  %v723_v44 = vld [vmem:[%s1440_s1 + $0x8] sm:$0xff]  ;;  %v840_v8 = vmul.f32 %v1373_v9, %v1353_v47 }
 0x180   :  { %v899_v58 = vsub.f32 %v888_v49, %v898_v50  ;;  %1063 = vrcp.f32 %v841_v62  ;;  %v816_v16 = vmul.f32 %v1373_v9, %v815_v13 }
 0x182   :  { %v1368_v0 = vmul.f32 0.5, %v899_v58  ;;  %v817_v30 = vsel %vm800_vm2, %v814_v15, %v816_v16  ;;  %v731_v58 = vsub.f32 %v722_v43, %v725_v45 }
 0x183   :  { %v846_v36 = vmul.f32 %v845_v24, %v817_v30 }
 0x184   :  { %1065 = vrcp.f32 %v1368_v0 }
 0x185   :  { %1067 = vrcp.f32 %v804_v12 }
 0x18a   :  { %v1064_v17 = vpop.eup %1063 }
 0x18b   :  { %v843_v31 = vmul.f32 %v1064_v17, %v1329_v5  ;;  %v876_v5 = vmul.f32 %v1379_v14, %v875_v25 }
 0x18d   :  { %v847_v37 = vmul.f32 %v843_v31, %v843_v31  ;;  %v906_v49 = vmul.f32 %v905_v40, %v876_v5 }
 0x18e   :  { %v1066_v33 = vpop.eup %1065 }
 0x18f   :  { %v903_v38 = vmul.f32 %v1066_v33, %v1334_v11  ;;  %v1068_v41 = vpop.eup %1067  ;;  %v848_v46 = vmul.f32 %v847_v37, %v846_v36  ;;  %v724_v11 = vld [vmem:[%s1440_s1 + $0x10] sm:$0xff] }
 0x191   :  { %v907_v50 = vmul.f32 %v903_v38, %v903_v38  ;;  %1069 = vlog2.f32 %v848_v46 }
 0x19b   :  { %v1070_v16 = vpop.eup %1069 }
 0x19c   :  { %v850_v30 = vmul.f32 0.6931472, %v1070_v16 }
 0x19e   :  { %v851_v46 = vadd.f32 4.8442006, %v850_v30 }
 0x1e4   :  { %v530_v52 = vpop.f32.mrb[16].mxu0 }
 0x1e5   :  { %v531_v35 = vadd.f32 %v530_v52, %v1360_v51  ;;  %v571_v39 = vpop.f32.mrb[16].mxu1  ;;  %v532_v53 = vpop.f32.mrb[17].mxu0  ;;  %v727_v52 = vld [vmem:[%s1440_s1 + $0x28] sm:$0xff] }
 0x1e6   :  { %v572_v54 = vadd.f32 %v571_v39, %v1360_v51  ;;  %v533_v55 = vadd.f32 %v532_v53, %v1360_v51  ;;  %v573_v56 = vpop.f32.mrb[17].mxu1  ;;  %v534_v57 = vpop.f32.mrb[18].mxu0  ;;  %v806_v39 = vmul.f32 %v1068_v41, %v1323_v3  ;;  %v733_v6 = vsub.f32 %v724_v11, %v727_v52 }
 0x1e7   :  { %660 = vst [vmem:[#allocation2] ss:$39 sps:$4 sm:$0x21] %v531_v35   ;;  %661 = vst [vmem:[#allocation2 + $0x7] ss:$25 sps:$4 sm:$0x12] %v531_v35   ;;  %v574_v59 = vadd.f32 %v573_v56, %v1360_v51 }
 0x1e8   :  { %662 = vst [vmem:[#allocation2 + $0xe] sm:$0x4] %v531_v35  ;;  %663 = vst [vmem:[#allocation2 + $0x15] sm:$0x8] %v531_v35  ;;  %v575_v60 = vpop.f32.mrb[18].mxu1  ;;  %v535_v61 = vpop.f32.mrb[19].mxu0 }
 0x1e9   :  { %672 = vst [vmem:[#allocation2 + $0x2] ss:$39 sps:$4 sm:$0x21] %v572_v54   ;;  %673 = vst [vmem:[#allocation2 + $0x9] ss:$25 sps:$4 sm:$0x12] %v572_v54   ;;  %v901_v60 = vmul.f32 %v1379_v14, %v1368_v0  ;;  %v908_v61 = vmul.f32 %v907_v50, %v906_v49 }
 0x1ea   :  { %674 = vst [vmem:[#allocation2 + $0x10] sm:$0x4] %v572_v54  ;;  %675 = vst [vmem:[#allocation2 + $0x17] sm:$0x8] %v572_v54  ;;  %v576_v2 = vpop.f32.mrb[19].mxu1  ;;  %v802_v35 = vadd.f32 0.5, %v801_v10 }
 0x1eb   :  { %666 = vst [vmem:[#allocation2 + $0x1] ss:$39 sps:$4 sm:$0x21] %v533_v55   ;;  %667 = vst [vmem:[#allocation2 + $0x8] ss:$25 sps:$4 sm:$0x12] %v533_v55  }
 0x1ec   :  { %668 = vst [vmem:[#allocation2 + $0xf] sm:$0x4] %v533_v55  ;;  %669 = vst [vmem:[#allocation2 + $0x16] sm:$0x8] %v533_v55  ;;  %v807_v2 = vsel %vm800_vm2, %v802_v35, %v806_v39  ;;  %v852_v35 = vsub.f32 0.0, %v851_v46 }
 0x1ed   :  { %678 = vst [vmem:[#allocation2 + $0x3] ss:$39 sps:$4 sm:$0x21] %v574_v59   ;;  %679 = vst [vmem:[#allocation2 + $0xa] ss:$25 sps:$4 sm:$0x12] %v574_v59   ;;  %v808_v7 = vmul.f32 %v807_v2, %v731_v58  ;;  %v810_v13 = vmul.f32 %v807_v2, %v733_v6 }
 0x1ee   :  { %680 = vst [vmem:[#allocation2 + $0x11] sm:$0x4] %v574_v59  ;;  %681 = vst [vmem:[#allocation2 + $0x18] sm:$0x8] %v574_v59  ;;  %v873_v59 = vmul.f32 %v1373_v9, %v989_v48 }
 0x1ef   :  { %v853_v42 = vmul.f32 %v840_v8, %v808_v7  ;;  %v859_v17 = vmul.f32 %v840_v8, %v810_v13 }
 0x1f0   :  { %v913_v10 = vmul.f32 %v901_v60, %v873_v59 }
 0x1f2   :  { %v914_v15 = vmul.f32 %v913_v10, %v808_v7 }
 0x1f3   :  { %v612_v27 = vpop.f32.mrb[20].mxu0 }
 0x1f4   :  { %v613_v18 = vadd.f32 %v612_v27, %v1360_v51  ;;  %v653_v19 = vpop.f32.mrb[20].mxu1  ;;  %v614_v20 = vpop.f32.mrb[21].mxu0  ;;  %v920_v27 = vmul.f32 %v913_v10, %v810_v13 }
 0x1f5   :  { %v654_v21 = vadd.f32 %v653_v19, %v1360_v51  ;;  %v615_v22 = vadd.f32 %v614_v20, %v1360_v51  ;;  %v655_v1 = vpop.f32.mrb[21].mxu1  ;;  %v616_v23 = vpop.f32.mrb[22].mxu0 }
 0x1f6   :  { %684 = vst [vmem:[#allocation2 + $0x4] ss:$39 sps:$4 sm:$0x21] %v613_v18   ;;  %685 = vst [vmem:[#allocation2 + $0xb] ss:$25 sps:$4 sm:$0x12] %v613_v18   ;;  %v656_v26 = vadd.f32 %v655_v1, %v1360_v51 }
 0x1f7   :  { %686 = vst [vmem:[#allocation2 + $0x12] sm:$0x4] %v613_v18  ;;  %687 = vst [vmem:[#allocation2 + $0x19] sm:$0x8] %v613_v18  ;;  %v657_v28 = vpop.f32.mrb[22].mxu1  ;;  %v617_v29 = vpop.f32.mrb[23].mxu0 }
 0x1f8   :  { %696 = vst [vmem:[#allocation2 + $0x6] ss:$39 sps:$4 sm:$0x21] %v654_v21   ;;  %697 = vst [vmem:[#allocation2 + $0xd] ss:$25 sps:$4 sm:$0x12] %v654_v21  }
 0x1f9   :  { %698 = vst [vmem:[#allocation2 + $0x14] sm:$0x4] %v654_v21  ;;  %699 = vst [vmem:[#allocation2 + $0x1b] sm:$0x8] %v654_v21  ;;  %v658_v34 = vpop.f32.mrb[23].mxu1  ;;  %v726_v51 = vld [vmem:[%s1440_s1 + $0x20] sm:$0xff] }
 0x1fa   :  { %690 = vst [vmem:[#allocation2 + $0x5] ss:$39 sps:$4 sm:$0x21] %v615_v22   ;;  %691 = vst [vmem:[#allocation2 + $0xc] ss:$25 sps:$4 sm:$0x12] %v615_v22   ;;  %v732_v63 = vsub.f32 %v723_v44, %v726_v51 }
 0x1fb   :  { %692 = vst [vmem:[#allocation2 + $0x13] sm:$0x4] %v615_v22  ;;  %693 = vst [vmem:[#allocation2 + $0x1a] sm:$0x8] %v615_v22  ;;  %s1137_s1 = smov [#allocation6]  }
 0x1fc   :  { %702 = vst [vmem:[#allocation2 + $0x7] ss:$39 sps:$4 sm:$0x21] %v656_v26   ;;  %703 = vst [vmem:[#allocation2 + $0xe] ss:$25 sps:$4 sm:$0x12] %v656_v26   ;;  %v809_v12 = vmul.f32 %v807_v2, %v732_v63 }
 0x1fd   :  { %704 = vst [vmem:[#allocation2 + $0x15] sm:$0x4] %v656_v26  ;;  %705 = vst [vmem:[#allocation2 + $0x1c] sm:$0x8] %v656_v26  ;;  %s958_s19 = sshll.u32 %s1137_s1, 4  ;;  %s959_s19 = int_to_ptr.vmem [resolvable:$true] %s958_s19 }
 0x1fe   :  { %v856_v0 = vmul.f32 %v840_v8, %v809_v12  ;;  %v917_v14 = vmul.f32 %v913_v10, %v809_v12  ;;  %s1105_s20 = scalar_lea.vmem %s959_s19, 128  ;;  %p1110_p9 = scmp.lt.s32.totalorder %s959_s19, %s959_s19 }
 0x1ff   :  { %p1106_p8 = scmp.ne.s32.totalorder %s959_s19, %s1105_s20  ;;  %p1111_p10 = scmp.lt.s32.totalorder %s1105_s20, %s1105_s20 }
 0x201   :  { %p1112_p11 = por %p1111_p10, %p1110_p9 }
 0x203   :  { %v712_v54 = vld [vmem:[#allocation2 + $0x20] sm:$0xff]  ;;  %v1415_v55 = vld [vmem:[#allocation2 + $0x28] sm:$0xff]  ;;  %p1113_p12 = pnand %p1112_p11, %p1106_p8 }
 0x204   :  { %v711_v53 = vld [vmem:[#allocation2 + $0x18] sm:$0xff]  ;;  %v716_v57 = vmul.f32 1.442695, %v712_v54  ;;  %v718_v62 = vmul.f32 1.442695, %v1415_v55  ;;  %v708_v22 = vld [vmem:[#allocation2] sm:$0xff] }
 0x205   :  { %v714_v56 = vmul.f32 1.442695, %v711_v53  ;;  %v709_v9 = vld [vmem:[#allocation2 + $0x8] sm:$0xff]  ;;  %v710_v29 = vld [vmem:[#allocation2 + $0x10] sm:$0xff]  ;;  %v720_v48 = vadd.f32 %v712_v54, %v711_v53 }
 0x207   :  { %1071 = vpow2.f32 %v714_v56  ;;  %v721_v39 = vadd.f32 %v720_v48, %v1415_v55 }
 0x208   :  { %1073 = vpow2.f32 %v716_v57 }
 0x209   :  { %1075 = vpow2.f32 %v718_v62 }
 0x20a   :  { %1077 = vlog2.f32 %v908_v61 }
 0x211   :  { %v1072_v3 = vpop.eup %1071 }
 0x212   :  { %v1074_v18 = vpop.eup %1073  ;;  %v854_v19 = vmul.f32 %v1072_v3, %v853_v42  ;;  %v915_v20 = vmul.f32 %v1072_v3, %v914_v15 }
 0x213   :  { %v1076_v21 = vpop.eup %1075  ;;  %v857_v1 = vmul.f32 %v1074_v18, %v856_v0  ;;  %v918_v23 = vmul.f32 %v1074_v18, %v917_v14 }
 0x214   :  { %v1078_v47 = vpop.eup %1077  ;;  %v855_v24 = vadd.f32 %v854_v19, %v708_v22  ;;  %v860_v25 = vmul.f32 %v1076_v21, %v859_v17  ;;  %v916_v26 = vadd.f32 %v915_v20, %v708_v22  ;;  %v921_v28 = vmul.f32 %v1076_v21, %v920_v27 }
 0x215   :  { %v858_v31 = vadd.f32 %v857_v1, %v709_v9  ;;  %v919_v32 = vadd.f32 %v918_v23, %v709_v9  ;;  %v910_v38 = vmul.f32 0.6931472, %v1078_v47 }
 0x216   :  { %v861_v33 = vadd.f32 %v860_v25, %v710_v29  ;;  %v862_v34 = vmul.f32 %v855_v24, %v855_v24  ;;  %v922_v36 = vadd.f32 %v921_v28, %v710_v29  ;;  %v923_v37 = vmul.f32 %v916_v26, %v916_v26 }
 0x217   :  { %v863_v5 = vmul.f32 %v858_v31, %v858_v31  ;;  %v924_v40 = vmul.f32 %v919_v32, %v919_v32  ;;  %v911_v50 = vadd.f32 4.8442006, %v910_v38 }
 0x218   :  { %v865_v43 = vmul.f32 %v861_v33, %v861_v33  ;;  %v926_v45 = vmul.f32 %v922_v36, %v922_v36 }
 0x219   :  { %v864_v41 = vadd.f32 %v863_v5, %v862_v34  ;;  %v925_v44 = vadd.f32 %v924_v40, %v923_v37  ;;  %v912_v57 = vsub.f32 0.0, %v911_v50 }
 0x21b   :  { %v866_v49 = vadd.f32 %v865_v43, %v864_v41  ;;  %v927_v11 = vadd.f32 %v926_v45, %v925_v44 }
 0x21d   :  { %v867_v51 = vmul.f32 -0.5, %v866_v49  ;;  %v928_v52 = vmul.f32 -0.5, %v927_v11 }
 0x21f   :  { %v868_v56 = vadd.f32 -2.7568157, %v867_v51  ;;  %v929_v62 = vadd.f32 -2.7568157, %v928_v52 }
 0x221   :  { %v869_v58 = vadd.f32 %v868_v56, %v721_v39  ;;  %v930_v59 = vadd.f32 %v929_v62, %v721_v39 }
 0x223   :  { %v870_v60 = vadd.f32 %v869_v58, %v852_v35  ;;  %v931_v61 = vadd.f32 %v930_v59, %v912_v57 }
 0x225   :  { %v933_v63 = vsel %vm932_vm3, %v931_v61, -1e+30 }
 0x226   :  { %v935_v2 = vsub.f32 %v870_v60, %v933_v63  ;;  %v934_v0 = vmax.f32 %v870_v60, %v933_v63 }
 0x228   :  { %v936_v53 = vand.u32 2147483647, %v935_v2 }
 0x22a   :  { %v937_v54 = vsub.f32 0.0, %v936_v53 }
 0x22c   :  { %v938_v6 = vmul.f32 1.442695, %v937_v54 }
 0x22e   :  { %1079 = vpow2.f32 %v938_v6 }
 0x238   :  { %v1080_v7 = vpop.eup %1079 }
 0x239   :  { %v940_v8 = vadd.f32 1.0, %v1080_v7  ;;  %v943_v10 = vmul.f32 -0.5, %v1080_v7  ;;  %v946_v12 = vand.u32 2147483647, %v1080_v7 }
 0x23b   :  { %1081 = vlog2.f32 %v940_v8  ;;  %v944_v55 = vadd.f32 1.0, %v943_v10  ;;  %vm947_vm4 = vcmp.lt.f32.partialorder %v946_v12, 0.0004427343 }
 0x23d   :  { %v945_v15 = vmul.f32 %v1080_v7, %v944_v55 }
 0x245   :  { %v1082_v13 = vpop.eup %1081 }
 0x246   :  { %v942_v42 = vmul.f32 0.6931472, %v1082_v13 }
 0x248   :  { %v948_v4 = vsel %vm947_vm4, %v945_v15, %v942_v42 }
 0x249   :  { %v949_v14 = vadd.f32 %v948_v4, %v934_v0 }
 0x24b   :  { %v950_v16 = vsub.f32 0.0, %v949_v14 }
 0x24d   :  { %951 = vst [vmem:[#allocation6] sm:$0xff] %v950_v16 }
 0x24e   :  { %1116 = shalt.err (!%p1113_p12)
}
 0x24f   :  { %s1117_s23 = scalar_lea.hbm %s1445_s6, 128 }
 0x250   :  { %p1118_p13 = scmp.ne.s32.totalorder %s1445_s6, %s1117_s23  ;;  %p1121_p0 = scmp.lt.u32.totalorder %s1117_s23, %s1445_s6 }
 0x252   :  { %p1123_p1 = pnand %p1121_p0, %p1118_p13 }
 0x254   :  { %1126 = shalt.err (!%p1123_p1)
}
 0x255   :  { %961 = dma.vmem_to_hbm [thread:$0]  %s959_s19, 128, %s1445_s6, [#allocation5]  }
 0x256   :  { %1129 = dma.done.wait [#allocation5], 128  }
 0x257   :  { %1130 = vsyncadd [#allocation5], 4294967168 }
 0x258   :  { %965 = vsyncpa [#allocation4], 1 }
 0x259   :  { %966 = vsyncpa [#allocation5], 1 }

</bundles_post_ra>
